<compile_context>
chip_gen: v5e
topology: v5e:2x2
jax: 0.10.0
libtpu: 0.0.40
codegen_flags: <defaults>
</compile_context>

<pallas_src>
import functools

import jax
import jax.numpy as jnp
from jax.experimental import pallas as pl
from jax.experimental.pallas import tpu as pltpu


def _round_up(v, m):
    return -(-v // m) * m


def _pick_images_per_step(N, per_image_bytes, *, vmem_budget=8 << 20, unroll_cap=8):
    """Images per grid step.

    As many as fit a conservative all-chip VMEM budget (double-buffered in/out blocks plus
    scratch), capped so the fully-unrolled tap loop stays small, kept <= N//2 when N >= 2 so
    there are >= 2 "parallel" grid steps for v7x's two TensorCores, and forced to divide N so
    no batch-padding copy of the input is ever materialized.
    """
    b = max(1, min(unroll_cap, int(vmem_budget // max(per_image_bytes, 1))))
    if N >= 2:
        b = min(b, N // 2)            # keep >= 2 grid steps (v7x megacore)
    b = max(1, min(b, N))
    while N % b:                      # largest divisor of N that is <= b
        b -= 1
    return b


def _conv_taps_kernel(x_ref, w_ref, o_ref, xs_ref, *, B, C, K, W, O_pad, L_in, Lout, L_ext):
    """One group of B images per grid step.

    x_ref : (B*C, L_in)     L_in = H*W; one flattened channel row per (image, channel).
    w_ref : (O_pad, T)      T = C*K*K, column order (c, kh, kw); tiny and resident.
    o_ref : (B*O_pad, Lout) flat conv output; image b occupies rows [b*O_pad, (b+1)*O_pad).
                            Position p = ho*W + wo; lanes with wo >= Wo or p >= Ho*W are
                            don't-care and are dropped by the wrapper / consumer.
    xs_ref: (B*C, L_ext)    f32 staging scratch: image rows + zero tail so every tap window
                            [d, d+Lout) is a static, in-bounds lane slice.
    """
    T = C * K * K

    # Stage the (upcast) image rows once with a zero tail.  This replaces the old
    # wrapper-side jnp.pad, which cost a full extra HBM pass over the input.
    xs_ref[:, :L_in] = x_ref[...].astype(jnp.float32)
    if L_ext > L_in:
        xs_ref[:, L_in:] = jnp.zeros((B * C, L_ext - L_in), jnp.float32)
    x_ext = xs_ref[...]                                      # (B*C, L_ext) f32

    # Pre-splat the T weight columns ONCE per grid step (amortized over B images and taps).
    w = w_ref[...].astype(jnp.float32)                        # (O_pad, T)
    w_splat = [jnp.broadcast_to(w[:, t:t + 1], (O_pad, Lout)) for t in range(T)]

    # out[b, o, p] = sum_{c,kh,kw} w[o, c*K*K + kh*K + kw] * x[b, c, p + kh*W + kw]
    # Per tap: one static lane-shifted slice + one VPU FMA.  No per-tap broadcasts.
    # TODO(synk): for O in the hundreds, replace this with one MXU jnp.dot over a stacked
    # (T_pad, Lout) tap matrix; at O_pad = 8 the VPU FMA path is the right call.
    for b in range(B):
        acc = jnp.zeros((O_pad, Lout), jnp.float32)
        for c in range(C):
            row = b * C + c
            # One sublane broadcast per (image, channel), hoisted out of the 9-tap loop.
            xrep = jnp.broadcast_to(x_ext[row:row + 1, :], (O_pad, L_ext))
            for kh in range(K):
                for kw in range(K):
                    d = kh * W + kw                           # static tap shift
                    t = c * K * K + kh * K + kw
                    acc = acc + w_splat[t] * xrep[:, d:d + Lout]
        o_ref[b * O_pad:(b + 1) * O_pad, :] = acc.astype(o_ref.dtype)


def conv_subset_forward_padded(x, patches, *, compute_dtype=jnp.bfloat16):
    """Fused ConvSubset forward, returning the kernel-native padded layout.

    x:       (N, C, H, W) float32 (NCHW, like the PyTorch module)
    patches: (O, C, K, K) float32 (== self.conv.weight, OIHW) -- kept in f32 (tiny)
    returns: (N, O_pad, Lout) float32 with O_pad = round_up(O, 8), Lout = round_up(Ho*W, 128);
             real output at [n, o, ho*W + wo] for o < O, ho < Ho, wo < Wo.

    compute_dtype applies only to the image tensor (the dominant HBM read term);
    accumulation is always f32.  Consumers that can use the padded layout avoid the extra
    crop pass done by conv_subset_forward.
    """
    N, C, H, W = x.shape
    O, C2, K, K2 = patches.shape
    assert C2 == C and K2 == K
    Ho, Wo = H - K + 1, W - K + 1
    HW = H * W
    T = C * K * K
    O_pad = _round_up(O, 8)
    Lout = _round_up(Ho * W, 128)            # lane-dense flat output width per image
    max_d = (K - 1) * W + (K - 1)            # largest tap shift
    L_ext = _round_up(Lout + max_d, 128)     # in-kernel zero-tailed staging width

    in_item = jnp.dtype(compute_dtype).itemsize
    per_image = 2 * C * HW * in_item + 2 * O_pad * Lout * 4 + C * L_ext * 4
    B = _pick_images_per_step(N, per_image)
    G = N // B

    # TODO(synk): once C*H*W grows past the VMEM budget at B = 1, add a second ("arbitrary")
    # grid axis over output-row tiles with a (K-1)-row halo so blocks keep double-buffering
    # on v7x's 64 MiB VMEM; unnecessary at random-feature image sizes.
    assert per_image <= (8 << 20), "image too large for whole-image blocking; see TODO above"

    # Pure metadata reshapes -- no padded copy of the input is materialized in HBM.
    x_rows = x.reshape(G, B * C, HW).astype(compute_dtype)
    w_mat = patches.reshape(O, T).astype(jnp.float32)         # (O, T), column order (c, kh, kw)
    if O_pad != O:
        w_mat = jnp.pad(w_mat, ((0, O_pad - O), (0, 0)))      # tiny constant pad

    kernel = functools.partial(
        _conv_taps_kernel,
        B=B, C=C, K=K, W=W, O_pad=O_pad, L_in=HW, Lout=Lout, L_ext=L_ext)

    out_rows = pl.pallas_call(
        kernel,
        out_shape=jax.ShapeDtypeStruct((G, B * O_pad, Lout), jnp.float32),
        grid_spec=pltpu.PrefetchScalarGridSpec(
            num_scalar_prefetch=0,
            grid=(G,),                                                   # B whole images/step
            in_specs=[
                pl.BlockSpec((None, B * C, HW), lambda g: (g, 0, 0)),    # sublane-dense images
                pl.BlockSpec((O_pad, T), lambda g: (0, 0)),              # tiny resident weights
            ],
            out_specs=pl.BlockSpec((None, B * O_pad, Lout), lambda g: (g, 0, 0)),
            scratch_shapes=[pltpu.VMEM((B * C, L_ext), jnp.float32)],
        ),
        compiler_params=pltpu.CompilerParams(
            dimension_semantics=("parallel",),     # >= 2 steps whenever N >= 2 (v7x megacore)
        ),
    )(x_rows, w_mat)

    return out_rows.reshape(N, O_pad, Lout)


def conv_subset_forward(x, patches, *, compute_dtype=jnp.bfloat16):
    """Forward of ConvSubset: Conv2d(3, O, K, bias=False), stride 1, VALID padding, NCHW.

    Returns (N, O, H-K+1, W-K+1) float32.  compute_dtype=bfloat16 (default) halves the
    input HBM read traffic with f32 accumulation; pass jnp.float32 for exact parity with
    the f32 PyTorch module.  The final crop is one strided pass over the (small) output;
    consumers that tolerate the padded layout should use conv_subset_forward_padded.
    """
    N, C, H, W = x.shape
    O, K = patches.shape[0], patches.shape[2]
    Ho, Wo = H - K + 1, W - K + 1
    out_pad = conv_subset_forward_padded(x, patches, compute_dtype=compute_dtype)
    return out_pad[:, :O, :Ho * W].reshape(N, O, Ho, W)[:, :, :, :Wo]


if __name__ == "__main__":
    key = jax.random.PRNGKey(0)
    kx, kp = jax.random.split(key)

    # Small shapes consistent with the module: Conv2d(3, O, K) on NCHW input.
    # N = 4 so the batched grid has B = 2 images/step and 2 parallel steps.
    N, C, H, W = 4, 3, 16, 16
    O, K = 8, 3                       # "patches" parameter: (O, 3, K, K)

    x = jax.random.normal(kx, (N, C, H, W), dtype=jnp.float32)
    patches = jax.random.normal(kp, (O, C, K, K), dtype=jnp.float32)

    dn = ("NCHW", "OIHW", "NCHW")

    # Default bf16 image path (f32 weights + f32 accumulation): compare against a reference
    # computed from the same bf16-rounded image so the tolerance stays tight.
    out_bf16 = jax.block_until_ready(jax.jit(conv_subset_forward)(x, patches))
    x_q = x.astype(jnp.bfloat16).astype(jnp.float32)
    ref_q = jax.lax.conv_general_dilated(
        x_q, patches, window_strides=(1, 1), padding="VALID",
        dimension_numbers=dn, precision=jax.lax.Precision.HIGHEST)
    assert out_bf16.shape == ref_q.shape == (N, O, H - K + 1, W - K + 1)
    assert jnp.allclose(out_bf16, ref_q, atol=1e-4, rtol=1e-4)

    # Full-f32 mode: exact parity with the f32 PyTorch module's conv.
    fwd_f32 = jax.jit(functools.partial(conv_subset_forward, compute_dtype=jnp.float32))
    out_f32 = jax.block_until_ready(fwd_f32(x, patches))
    ref = jax.lax.conv_general_dilated(
        x, patches, window_strides=(1, 1), padding="VALID",
        dimension_numbers=dn, precision=jax.lax.Precision.HIGHEST)
    assert jnp.allclose(out_f32, ref, atol=1e-4, rtol=1e-4)

    print("KERNEL_OK")
</pallas_src>

<mosaic_0001>
module attributes {stable_mosaic.version = 11 : i64} {
  func.func @_conv_taps_kernel(%arg0: i32, %arg1: memref<1x6x256xbf16, #tpu.memory_space<vmem>>, %arg2: memref<8x27xf32, #tpu.memory_space<vmem>>, %arg3: memref<1x16x256xf32, #tpu.memory_space<vmem>>, %arg4: memref<6x384xf32, #tpu.memory_space<vmem>>) attributes {dimension_semantics = [#tpu.dimension_semantics<parallel>], iteration_bounds = array<i64: 2>, scalar_prefetch = 0 : i64, scratch_operands = 1 : i64, tpu.core_type = #tpu.core_type<tc>, window_params = [{transform_indices = @transform_0, window_bounds = array<i64: 1, 6, 256>}, {pipeline_mode = #tpu.pipeline_mode<synchronous>, transform_indices = @transform_1, window_bounds = array<i64: 8, 27>}, {transform_indices = @transform_2, window_bounds = array<i64: 1, 16, 256>}]} {
    %c0 = arith.constant 0 : index
    %c0_0 = arith.constant 0 : index
    %c0_1 = arith.constant 0 : index
    %0 = vector.load %arg1[%c0, %c0_0, %c0_1] : memref<1x6x256xbf16, #tpu.memory_space<vmem>>, vector<1x6x256xbf16>
    %1 = vector.shape_cast %0 : vector<1x6x256xbf16> to vector<6x256xbf16>
    %2 = arith.extf %1 : vector<6x256xbf16> to vector<6x256xf32>
    %c0_2 = arith.constant 0 : index
    %c0_3 = arith.constant 0 : index
    %3 = vector.load %arg4[%c0_2, %c0_3] : memref<6x384xf32, #tpu.memory_space<vmem>>, vector<6x256xf32>
    tpu.vector_store %arg4[%c0_2, %c0_3], %2 {strides = array<i32>} : memref<6x384xf32, #tpu.memory_space<vmem>>, vector<6x256xf32>,
    %cst = arith.constant 0.000000e+00 : f32
    %4 = vector.broadcast %cst : f32 to vector<6x128xf32>
    %c0_4 = arith.constant 0 : index
    %c256 = arith.constant 256 : index
    %5 = vector.load %arg4[%c0_4, %c256] : memref<6x384xf32, #tpu.memory_space<vmem>>, vector<6x128xf32>
    tpu.vector_store %arg4[%c0_4, %c256], %4 {strides = array<i32>} : memref<6x384xf32, #tpu.memory_space<vmem>>, vector<6x128xf32>,
    %c0_5 = arith.constant 0 : index
    %c0_6 = arith.constant 0 : index
    %6 = vector.load %arg4[%c0_5, %c0_6] : memref<6x384xf32, #tpu.memory_space<vmem>>, vector<6x384xf32>
    %c0_7 = arith.constant 0 : index
    %c0_8 = arith.constant 0 : index
    %7 = vector.load %arg2[%c0_7, %c0_8] : memref<8x27xf32, #tpu.memory_space<vmem>>, vector<8x27xf32>
    %8 = vector.extract_strided_slice %7 {offsets = [0, 0], sizes = [8, 1], strides = [1, 1]} : vector<8x27xf32> to vector<8x1xf32>
    %9 = vector.shape_cast %8 : vector<8x1xf32> to vector<8x1xf32>
    %10 = vector.broadcast %9 : vector<8x1xf32> to vector<8x256xf32>
    %11 = vector.extract_strided_slice %7 {offsets = [0, 1], sizes = [8, 1], strides = [1, 1]} : vector<8x27xf32> to vector<8x1xf32>
    %12 = vector.shape_cast %11 : vector<8x1xf32> to vector<8x1xf32>
    %13 = vector.broadcast %12 : vector<8x1xf32> to vector<8x256xf32>
    %14 = vector.extract_strided_slice %7 {offsets = [0, 2], sizes = [8, 1], strides = [1, 1]} : vector<8x27xf32> to vector<8x1xf32>
    %15 = vector.shape_cast %14 : vector<8x1xf32> to vector<8x1xf32>
    %16 = vector.broadcast %15 : vector<8x1xf32> to vector<8x256xf32>
    %17 = vector.extract_strided_slice %7 {offsets = [0, 3], sizes = [8, 1], strides = [1, 1]} : vector<8x27xf32> to vector<8x1xf32>
    %18 = vector.shape_cast %17 : vector<8x1xf32> to vector<8x1xf32>
    %19 = vector.broadcast %18 : vector<8x1xf32> to vector<8x256xf32>
    %20 = vector.extract_strided_slice %7 {offsets = [0, 4], sizes = [8, 1], strides = [1, 1]} : vector<8x27xf32> to vector<8x1xf32>
    %21 = vector.shape_cast %20 : vector<8x1xf32> to vector<8x1xf32>
    %22 = vector.broadcast %21 : vector<8x1xf32> to vector<8x256xf32>
    %23 = vector.extract_strided_slice %7 {offsets = [0, 5], sizes = [8, 1], strides = [1, 1]} : vector<8x27xf32> to vector<8x1xf32>
    %24 = vector.shape_cast %23 : vector<8x1xf32> to vector<8x1xf32>
    %25 = vector.broadcast %24 : vector<8x1xf32> to vector<8x256xf32>
    %26 = vector.extract_strided_slice %7 {offsets = [0, 6], sizes = [8, 1], strides = [1, 1]} : vector<8x27xf32> to vector<8x1xf32>
    %27 = vector.shape_cast %26 : vector<8x1xf32> to vector<8x1xf32>
    %28 = vector.broadcast %27 : vector<8x1xf32> to vector<8x256xf32>
    %29 = vector.extract_strided_slice %7 {offsets = [0, 7], sizes = [8, 1], strides = [1, 1]} : vector<8x27xf32> to vector<8x1xf32>
    %30 = vector.shape_cast %29 : vector<8x1xf32> to vector<8x1xf32>
    %31 = vector.broadcast %30 : vector<8x1xf32> to vector<8x256xf32>
    %32 = vector.extract_strided_slice %7 {offsets = [0, 8], sizes = [8, 1], strides = [1, 1]} : vector<8x27xf32> to vector<8x1xf32>
    %33 = vector.shape_cast %32 : vector<8x1xf32> to vector<8x1xf32>
    %34 = vector.broadcast %33 : vector<8x1xf32> to vector<8x256xf32>
    %35 = vector.extract_strided_slice %7 {offsets = [0, 9], sizes = [8, 1], strides = [1, 1]} : vector<8x27xf32> to vector<8x1xf32>
    %36 = vector.shape_cast %35 : vector<8x1xf32> to vector<8x1xf32>
    %37 = vector.broadcast %36 : vector<8x1xf32> to vector<8x256xf32>
    %38 = vector.extract_strided_slice %7 {offsets = [0, 10], sizes = [8, 1], strides = [1, 1]} : vector<8x27xf32> to vector<8x1xf32>
    %39 = vector.shape_cast %38 : vector<8x1xf32> to vector<8x1xf32>
    %40 = vector.broadcast %39 : vector<8x1xf32> to vector<8x256xf32>
    %41 = vector.extract_strided_slice %7 {offsets = [0, 11], sizes = [8, 1], strides = [1, 1]} : vector<8x27xf32> to vector<8x1xf32>
    %42 = vector.shape_cast %41 : vector<8x1xf32> to vector<8x1xf32>
    %43 = vector.broadcast %42 : vector<8x1xf32> to vector<8x256xf32>
    %44 = vector.extract_strided_slice %7 {offsets = [0, 12], sizes = [8, 1], strides = [1, 1]} : vector<8x27xf32> to vector<8x1xf32>
    %45 = vector.shape_cast %44 : vector<8x1xf32> to vector<8x1xf32>
    %46 = vector.broadcast %45 : vector<8x1xf32> to vector<8x256xf32>
    %47 = vector.extract_strided_slice %7 {offsets = [0, 13], sizes = [8, 1], strides = [1, 1]} : vector<8x27xf32> to vector<8x1xf32>
    %48 = vector.shape_cast %47 : vector<8x1xf32> to vector<8x1xf32>
    %49 = vector.broadcast %48 : vector<8x1xf32> to vector<8x256xf32>
    %50 = vector.extract_strided_slice %7 {offsets = [0, 14], sizes = [8, 1], strides = [1, 1]} : vector<8x27xf32> to vector<8x1xf32>
    %51 = vector.shape_cast %50 : vector<8x1xf32> to vector<8x1xf32>
    %52 = vector.broadcast %51 : vector<8x1xf32> to vector<8x256xf32>
    %53 = vector.extract_strided_slice %7 {offsets = [0, 15], sizes = [8, 1], strides = [1, 1]} : vector<8x27xf32> to vector<8x1xf32>
    %54 = vector.shape_cast %53 : vector<8x1xf32> to vector<8x1xf32>
    %55 = vector.broadcast %54 : vector<8x1xf32> to vector<8x256xf32>
    %56 = vector.extract_strided_slice %7 {offsets = [0, 16], sizes = [8, 1], strides = [1, 1]} : vector<8x27xf32> to vector<8x1xf32>
    %57 = vector.shape_cast %56 : vector<8x1xf32> to vector<8x1xf32>
    %58 = vector.broadcast %57 : vector<8x1xf32> to vector<8x256xf32>
    %59 = vector.extract_strided_slice %7 {offsets = [0, 17], sizes = [8, 1], strides = [1, 1]} : vector<8x27xf32> to vector<8x1xf32>
    %60 = vector.shape_cast %59 : vector<8x1xf32> to vector<8x1xf32>
    %61 = vector.broadcast %60 : vector<8x1xf32> to vector<8x256xf32>
    %62 = vector.extract_strided_slice %7 {offsets = [0, 18], sizes = [8, 1], strides = [1, 1]} : vector<8x27xf32> to vector<8x1xf32>
    %63 = vector.shape_cast %62 : vector<8x1xf32> to vector<8x1xf32>
    %64 = vector.broadcast %63 : vector<8x1xf32> to vector<8x256xf32>
    %65 = vector.extract_strided_slice %7 {offsets = [0, 19], sizes = [8, 1], strides = [1, 1]} : vector<8x27xf32> to vector<8x1xf32>
    %66 = vector.shape_cast %65 : vector<8x1xf32> to vector<8x1xf32>
    %67 = vector.broadcast %66 : vector<8x1xf32> to vector<8x256xf32>
    %68 = vector.extract_strided_slice %7 {offsets = [0, 20], sizes = [8, 1], strides = [1, 1]} : vector<8x27xf32> to vector<8x1xf32>
    %69 = vector.shape_cast %68 : vector<8x1xf32> to vector<8x1xf32>
    %70 = vector.broadcast %69 : vector<8x1xf32> to vector<8x256xf32>
    %71 = vector.extract_strided_slice %7 {offsets = [0, 21], sizes = [8, 1], strides = [1, 1]} : vector<8x27xf32> to vector<8x1xf32>
    %72 = vector.shape_cast %71 : vector<8x1xf32> to vector<8x1xf32>
    %73 = vector.broadcast %72 : vector<8x1xf32> to vector<8x256xf32>
    %74 = vector.extract_strided_slice %7 {offsets = [0, 22], sizes = [8, 1], strides = [1, 1]} : vector<8x27xf32> to vector<8x1xf32>
    %75 = vector.shape_cast %74 : vector<8x1xf32> to vector<8x1xf32>
    %76 = vector.broadcast %75 : vector<8x1xf32> to vector<8x256xf32>
    %77 = vector.extract_strided_slice %7 {offsets = [0, 23], sizes = [8, 1], strides = [1, 1]} : vector<8x27xf32> to vector<8x1xf32>
    %78 = vector.shape_cast %77 : vector<8x1xf32> to vector<8x1xf32>
    %79 = vector.broadcast %78 : vector<8x1xf32> to vector<8x256xf32>
    %80 = vector.extract_strided_slice %7 {offsets = [0, 24], sizes = [8, 1], strides = [1, 1]} : vector<8x27xf32> to vector<8x1xf32>
    %81 = vector.shape_cast %80 : vector<8x1xf32> to vector<8x1xf32>
    %82 = vector.broadcast %81 : vector<8x1xf32> to vector<8x256xf32>
    %83 = vector.extract_strided_slice %7 {offsets = [0, 25], sizes = [8, 1], strides = [1, 1]} : vector<8x27xf32> to vector<8x1xf32>
    %84 = vector.shape_cast %83 : vector<8x1xf32> to vector<8x1xf32>
    %85 = vector.broadcast %84 : vector<8x1xf32> to vector<8x256xf32>
    %86 = vector.extract_strided_slice %7 {offsets = [0, 26], sizes = [8, 1], strides = [1, 1]} : vector<8x27xf32> to vector<8x1xf32>
    %87 = vector.shape_cast %86 : vector<8x1xf32> to vector<8x1xf32>
    %88 = vector.broadcast %87 : vector<8x1xf32> to vector<8x256xf32>
    %cst_9 = arith.constant 0.000000e+00 : f32
    %89 = vector.broadcast %cst_9 : f32 to vector<8x256xf32>
    %90 = vector.extract_strided_slice %6 {offsets = [0, 0], sizes = [1, 384], strides = [1, 1]} : vector<6x384xf32> to vector<1x384xf32>
    %91 = vector.shape_cast %90 : vector<1x384xf32> to vector<1x384xf32>
    %92 = vector.broadcast %91 : vector<1x384xf32> to vector<8x384xf32>
    %93 = vector.extract_strided_slice %92 {offsets = [0, 0], sizes = [8, 256], strides = [1, 1]} : vector<8x384xf32> to vector<8x256xf32>
    %94 = arith.mulf %10, %93 : vector<8x256xf32>
    %95 = arith.addf %89, %94 : vector<8x256xf32>
    %96 = vector.extract_strided_slice %92 {offsets = [0, 1], sizes = [8, 256], strides = [1, 1]} : vector<8x384xf32> to vector<8x256xf32>
    %97 = arith.mulf %13, %96 : vector<8x256xf32>
    %98 = arith.addf %95, %97 : vector<8x256xf32>
    %99 = vector.extract_strided_slice %92 {offsets = [0, 2], sizes = [8, 256], strides = [1, 1]} : vector<8x384xf32> to vector<8x256xf32>
    %100 = arith.mulf %16, %99 : vector<8x256xf32>
    %101 = arith.addf %98, %100 : vector<8x256xf32>
    %102 = vector.extract_strided_slice %92 {offsets = [0, 16], sizes = [8, 256], strides = [1, 1]} : vector<8x384xf32> to vector<8x256xf32>
    %103 = arith.mulf %19, %102 : vector<8x256xf32>
    %104 = arith.addf %101, %103 : vector<8x256xf32>
    %105 = vector.extract_strided_slice %92 {offsets = [0, 17], sizes = [8, 256], strides = [1, 1]} : vector<8x384xf32> to vector<8x256xf32>
    %106 = arith.mulf %22, %105 : vector<8x256xf32>
    %107 = arith.addf %104, %106 : vector<8x256xf32>
    %108 = vector.extract_strided_slice %92 {offsets = [0, 18], sizes = [8, 256], strides = [1, 1]} : vector<8x384xf32> to vector<8x256xf32>
    %109 = arith.mulf %25, %108 : vector<8x256xf32>
    %110 = arith.addf %107, %109 : vector<8x256xf32>
    %111 = vector.extract_strided_slice %92 {offsets = [0, 32], sizes = [8, 256], strides = [1, 1]} : vector<8x384xf32> to vector<8x256xf32>
    %112 = arith.mulf %28, %111 : vector<8x256xf32>
    %113 = arith.addf %110, %112 : vector<8x256xf32>
    %114 = vector.extract_strided_slice %92 {offsets = [0, 33], sizes = [8, 256], strides = [1, 1]} : vector<8x384xf32> to vector<8x256xf32>
    %115 = arith.mulf %31, %114 : vector<8x256xf32>
    %116 = arith.addf %113, %115 : vector<8x256xf32>
    %117 = vector.extract_strided_slice %92 {offsets = [0, 34], sizes = [8, 256], strides = [1, 1]} : vector<8x384xf32> to vector<8x256xf32>
    %118 = arith.mulf %34, %117 : vector<8x256xf32>
    %119 = arith.addf %116, %118 : vector<8x256xf32>
    %120 = vector.extract_strided_slice %6 {offsets = [1, 0], sizes = [1, 384], strides = [1, 1]} : vector<6x384xf32> to vector<1x384xf32>
    %121 = vector.shape_cast %120 : vector<1x384xf32> to vector<1x384xf32>
    %122 = vector.broadcast %121 : vector<1x384xf32> to vector<8x384xf32>
    %123 = vector.extract_strided_slice %122 {offsets = [0, 0], sizes = [8, 256], strides = [1, 1]} : vector<8x384xf32> to vector<8x256xf32>
    %124 = arith.mulf %37, %123 : vector<8x256xf32>
    %125 = arith.addf %119, %124 : vector<8x256xf32>
    %126 = vector.extract_strided_slice %122 {offsets = [0, 1], sizes = [8, 256], strides = [1, 1]} : vector<8x384xf32> to vector<8x256xf32>
    %127 = arith.mulf %40, %126 : vector<8x256xf32>
    %128 = arith.addf %125, %127 : vector<8x256xf32>
    %129 = vector.extract_strided_slice %122 {offsets = [0, 2], sizes = [8, 256], strides = [1, 1]} : vector<8x384xf32> to vector<8x256xf32>
    %130 = arith.mulf %43, %129 : vector<8x256xf32>
    %131 = arith.addf %128, %130 : vector<8x256xf32>
    %132 = vector.extract_strided_slice %122 {offsets = [0, 16], sizes = [8, 256], strides = [1, 1]} : vector<8x384xf32> to vector<8x256xf32>
    %133 = arith.mulf %46, %132 : vector<8x256xf32>
    %134 = arith.addf %131, %133 : vector<8x256xf32>
    %135 = vector.extract_strided_slice %122 {offsets = [0, 17], sizes = [8, 256], strides = [1, 1]} : vector<8x384xf32> to vector<8x256xf32>
    %136 = arith.mulf %49, %135 : vector<8x256xf32>
    %137 = arith.addf %134, %136 : vector<8x256xf32>
    %138 = vector.extract_strided_slice %122 {offsets = [0, 18], sizes = [8, 256], strides = [1, 1]} : vector<8x384xf32> to vector<8x256xf32>
    %139 = arith.mulf %52, %138 : vector<8x256xf32>
    %140 = arith.addf %137, %139 : vector<8x256xf32>
    %141 = vector.extract_strided_slice %122 {offsets = [0, 32], sizes = [8, 256], strides = [1, 1]} : vector<8x384xf32> to vector<8x256xf32>
    %142 = arith.mulf %55, %141 : vector<8x256xf32>
    %143 = arith.addf %140, %142 : vector<8x256xf32>
    %144 = vector.extract_strided_slice %122 {offsets = [0, 33], sizes = [8, 256], strides = [1, 1]} : vector<8x384xf32> to vector<8x256xf32>
    %145 = arith.mulf %58, %144 : vector<8x256xf32>
    %146 = arith.addf %143, %145 : vector<8x256xf32>
    %147 = vector.extract_strided_slice %122 {offsets = [0, 34], sizes = [8, 256], strides = [1, 1]} : vector<8x384xf32> to vector<8x256xf32>
    %148 = arith.mulf %61, %147 : vector<8x256xf32>
    %149 = arith.addf %146, %148 : vector<8x256xf32>
    %150 = vector.extract_strided_slice %6 {offsets = [2, 0], sizes = [1, 384], strides = [1, 1]} : vector<6x384xf32> to vector<1x384xf32>
    %151 = vector.shape_cast %150 : vector<1x384xf32> to vector<1x384xf32>
    %152 = vector.broadcast %151 : vector<1x384xf32> to vector<8x384xf32>
    %153 = vector.extract_strided_slice %152 {offsets = [0, 0], sizes = [8, 256], strides = [1, 1]} : vector<8x384xf32> to vector<8x256xf32>
    %154 = arith.mulf %64, %153 : vector<8x256xf32>
    %155 = arith.addf %149, %154 : vector<8x256xf32>
    %156 = vector.extract_strided_slice %152 {offsets = [0, 1], sizes = [8, 256], strides = [1, 1]} : vector<8x384xf32> to vector<8x256xf32>
    %157 = arith.mulf %67, %156 : vector<8x256xf32>
    %158 = arith.addf %155, %157 : vector<8x256xf32>
    %159 = vector.extract_strided_slice %152 {offsets = [0, 2], sizes = [8, 256], strides = [1, 1]} : vector<8x384xf32> to vector<8x256xf32>
    %160 = arith.mulf %70, %159 : vector<8x256xf32>
    %161 = arith.addf %158, %160 : vector<8x256xf32>
    %162 = vector.extract_strided_slice %152 {offsets = [0, 16], sizes = [8, 256], strides = [1, 1]} : vector<8x384xf32> to vector<8x256xf32>
    %163 = arith.mulf %73, %162 : vector<8x256xf32>
    %164 = arith.addf %161, %163 : vector<8x256xf32>
    %165 = vector.extract_strided_slice %152 {offsets = [0, 17], sizes = [8, 256], strides = [1, 1]} : vector<8x384xf32> to vector<8x256xf32>
    %166 = arith.mulf %76, %165 : vector<8x256xf32>
    %167 = arith.addf %164, %166 : vector<8x256xf32>
    %168 = vector.extract_strided_slice %152 {offsets = [0, 18], sizes = [8, 256], strides = [1, 1]} : vector<8x384xf32> to vector<8x256xf32>
    %169 = arith.mulf %79, %168 : vector<8x256xf32>
    %170 = arith.addf %167, %169 : vector<8x256xf32>
    %171 = vector.extract_strided_slice %152 {offsets = [0, 32], sizes = [8, 256], strides = [1, 1]} : vector<8x384xf32> to vector<8x256xf32>
    %172 = arith.mulf %82, %171 : vector<8x256xf32>
    %173 = arith.addf %170, %172 : vector<8x256xf32>
    %174 = vector.extract_strided_slice %152 {offsets = [0, 33], sizes = [8, 256], strides = [1, 1]} : vector<8x384xf32> to vector<8x256xf32>
    %175 = arith.mulf %85, %174 : vector<8x256xf32>
    %176 = arith.addf %173, %175 : vector<8x256xf32>
    %177 = vector.extract_strided_slice %152 {offsets = [0, 34], sizes = [8, 256], strides = [1, 1]} : vector<8x384xf32> to vector<8x256xf32>
    %178 = arith.mulf %88, %177 : vector<8x256xf32>
    %179 = arith.addf %176, %178 : vector<8x256xf32>
    %c0_10 = arith.constant 0 : index
    %c0_11 = arith.constant 0 : index
    %c0_12 = arith.constant 0 : index
    %180 = vector.load %arg3[%c0_10, %c0_11, %c0_12] : memref<1x16x256xf32, #tpu.memory_space<vmem>>, vector<1x8x256xf32>
    %181 = vector.shape_cast %180 : vector<1x8x256xf32> to vector<8x256xf32>
    %182 = vector.shape_cast %179 : vector<8x256xf32> to vector<1x8x256xf32>
    tpu.vector_store %arg3[%c0_10, %c0_11, %c0_12], %182 {strides = array<i32>} : memref<1x16x256xf32, #tpu.memory_space<vmem>>, vector<1x8x256xf32>,
    %cst_13 = arith.constant 0.000000e+00 : f32
    %183 = vector.broadcast %cst_13 : f32 to vector<8x256xf32>
    %184 = vector.extract_strided_slice %6 {offsets = [3, 0], sizes = [1, 384], strides = [1, 1]} : vector<6x384xf32> to vector<1x384xf32>
    %185 = vector.shape_cast %184 : vector<1x384xf32> to vector<1x384xf32>
    %186 = vector.broadcast %185 : vector<1x384xf32> to vector<8x384xf32>
    %187 = vector.extract_strided_slice %186 {offsets = [0, 0], sizes = [8, 256], strides = [1, 1]} : vector<8x384xf32> to vector<8x256xf32>
    %188 = arith.mulf %10, %187 : vector<8x256xf32>
    %189 = arith.addf %183, %188 : vector<8x256xf32>
    %190 = vector.extract_strided_slice %186 {offsets = [0, 1], sizes = [8, 256], strides = [1, 1]} : vector<8x384xf32> to vector<8x256xf32>
    %191 = arith.mulf %13, %190 : vector<8x256xf32>
    %192 = arith.addf %189, %191 : vector<8x256xf32>
    %193 = vector.extract_strided_slice %186 {offsets = [0, 2], sizes = [8, 256], strides = [1, 1]} : vector<8x384xf32> to vector<8x256xf32>
    %194 = arith.mulf %16, %193 : vector<8x256xf32>
    %195 = arith.addf %192, %194 : vector<8x256xf32>
    %196 = vector.extract_strided_slice %186 {offsets = [0, 16], sizes = [8, 256], strides = [1, 1]} : vector<8x384xf32> to vector<8x256xf32>
    %197 = arith.mulf %19, %196 : vector<8x256xf32>
    %198 = arith.addf %195, %197 : vector<8x256xf32>
    %199 = vector.extract_strided_slice %186 {offsets = [0, 17], sizes = [8, 256], strides = [1, 1]} : vector<8x384xf32> to vector<8x256xf32>
    %200 = arith.mulf %22, %199 : vector<8x256xf32>
    %201 = arith.addf %198, %200 : vector<8x256xf32>
    %202 = vector.extract_strided_slice %186 {offsets = [0, 18], sizes = [8, 256], strides = [1, 1]} : vector<8x384xf32> to vector<8x256xf32>
    %203 = arith.mulf %25, %202 : vector<8x256xf32>
    %204 = arith.addf %201, %203 : vector<8x256xf32>
    %205 = vector.extract_strided_slice %186 {offsets = [0, 32], sizes = [8, 256], strides = [1, 1]} : vector<8x384xf32> to vector<8x256xf32>
    %206 = arith.mulf %28, %205 : vector<8x256xf32>
    %207 = arith.addf %204, %206 : vector<8x256xf32>
    %208 = vector.extract_strided_slice %186 {offsets = [0, 33], sizes = [8, 256], strides = [1, 1]} : vector<8x384xf32> to vector<8x256xf32>
    %209 = arith.mulf %31, %208 : vector<8x256xf32>
    %210 = arith.addf %207, %209 : vector<8x256xf32>
    %211 = vector.extract_strided_slice %186 {offsets = [0, 34], sizes = [8, 256], strides = [1, 1]} : vector<8x384xf32> to vector<8x256xf32>
    %212 = arith.mulf %34, %211 : vector<8x256xf32>
    %213 = arith.addf %210, %212 : vector<8x256xf32>
    %214 = vector.extract_strided_slice %6 {offsets = [4, 0], sizes = [1, 384], strides = [1, 1]} : vector<6x384xf32> to vector<1x384xf32>
    %215 = vector.shape_cast %214 : vector<1x384xf32> to vector<1x384xf32>
    %216 = vector.broadcast %215 : vector<1x384xf32> to vector<8x384xf32>
    %217 = vector.extract_strided_slice %216 {offsets = [0, 0], sizes = [8, 256], strides = [1, 1]} : vector<8x384xf32> to vector<8x256xf32>
    %218 = arith.mulf %37, %217 : vector<8x256xf32>
    %219 = arith.addf %213, %218 : vector<8x256xf32>
    %220 = vector.extract_strided_slice %216 {offsets = [0, 1], sizes = [8, 256], strides = [1, 1]} : vector<8x384xf32> to vector<8x256xf32>
    %221 = arith.mulf %40, %220 : vector<8x256xf32>
    %222 = arith.addf %219, %221 : vector<8x256xf32>
    %223 = vector.extract_strided_slice %216 {offsets = [0, 2], sizes = [8, 256], strides = [1, 1]} : vector<8x384xf32> to vector<8x256xf32>
    %224 = arith.mulf %43, %223 : vector<8x256xf32>
    %225 = arith.addf %222, %224 : vector<8x256xf32>
    %226 = vector.extract_strided_slice %216 {offsets = [0, 16], sizes = [8, 256], strides = [1, 1]} : vector<8x384xf32> to vector<8x256xf32>
    %227 = arith.mulf %46, %226 : vector<8x256xf32>
    %228 = arith.addf %225, %227 : vector<8x256xf32>
    %229 = vector.extract_strided_slice %216 {offsets = [0, 17], sizes = [8, 256], strides = [1, 1]} : vector<8x384xf32> to vector<8x256xf32>
    %230 = arith.mulf %49, %229 : vector<8x256xf32>
    %231 = arith.addf %228, %230 : vector<8x256xf32>
    %232 = vector.extract_strided_slice %216 {offsets = [0, 18], sizes = [8, 256], strides = [1, 1]} : vector<8x384xf32> to vector<8x256xf32>
    %233 = arith.mulf %52, %232 : vector<8x256xf32>
    %234 = arith.addf %231, %233 : vector<8x256xf32>
    %235 = vector.extract_strided_slice %216 {offsets = [0, 32], sizes = [8, 256], strides = [1, 1]} : vector<8x384xf32> to vector<8x256xf32>
    %236 = arith.mulf %55, %235 : vector<8x256xf32>
    %237 = arith.addf %234, %236 : vector<8x256xf32>
    %238 = vector.extract_strided_slice %216 {offsets = [0, 33], sizes = [8, 256], strides = [1, 1]} : vector<8x384xf32> to vector<8x256xf32>
    %239 = arith.mulf %58, %238 : vector<8x256xf32>
    %240 = arith.addf %237, %239 : vector<8x256xf32>
    %241 = vector.extract_strided_slice %216 {offsets = [0, 34], sizes = [8, 256], strides = [1, 1]} : vector<8x384xf32> to vector<8x256xf32>
    %242 = arith.mulf %61, %241 : vector<8x256xf32>
    %243 = arith.addf %240, %242 : vector<8x256xf32>
    %244 = vector.extract_strided_slice %6 {offsets = [5, 0], sizes = [1, 384], strides = [1, 1]} : vector<6x384xf32> to vector<1x384xf32>
    %245 = vector.shape_cast %244 : vector<1x384xf32> to vector<1x384xf32>
    %246 = vector.broadcast %245 : vector<1x384xf32> to vector<8x384xf32>
    %247 = vector.extract_strided_slice %246 {offsets = [0, 0], sizes = [8, 256], strides = [1, 1]} : vector<8x384xf32> to vector<8x256xf32>
    %248 = arith.mulf %64, %247 : vector<8x256xf32>
    %249 = arith.addf %243, %248 : vector<8x256xf32>
    %250 = vector.extract_strided_slice %246 {offsets = [0, 1], sizes = [8, 256], strides = [1, 1]} : vector<8x384xf32> to vector<8x256xf32>
    %251 = arith.mulf %67, %250 : vector<8x256xf32>
    %252 = arith.addf %249, %251 : vector<8x256xf32>
    %253 = vector.extract_strided_slice %246 {offsets = [0, 2], sizes = [8, 256], strides = [1, 1]} : vector<8x384xf32> to vector<8x256xf32>
    %254 = arith.mulf %70, %253 : vector<8x256xf32>
    %255 = arith.addf %252, %254 : vector<8x256xf32>
    %256 = vector.extract_strided_slice %246 {offsets = [0, 16], sizes = [8, 256], strides = [1, 1]} : vector<8x384xf32> to vector<8x256xf32>
    %257 = arith.mulf %73, %256 : vector<8x256xf32>
    %258 = arith.addf %255, %257 : vector<8x256xf32>
    %259 = vector.extract_strided_slice %246 {offsets = [0, 17], sizes = [8, 256], strides = [1, 1]} : vector<8x384xf32> to vector<8x256xf32>
    %260 = arith.mulf %76, %259 : vector<8x256xf32>
    %261 = arith.addf %258, %260 : vector<8x256xf32>
    %262 = vector.extract_strided_slice %246 {offsets = [0, 18], sizes = [8, 256], strides = [1, 1]} : vector<8x384xf32> to vector<8x256xf32>
    %263 = arith.mulf %79, %262 : vector<8x256xf32>
    %264 = arith.addf %261, %263 : vector<8x256xf32>
    %265 = vector.extract_strided_slice %246 {offsets = [0, 32], sizes = [8, 256], strides = [1, 1]} : vector<8x384xf32> to vector<8x256xf32>
    %266 = arith.mulf %82, %265 : vector<8x256xf32>
    %267 = arith.addf %264, %266 : vector<8x256xf32>
    %268 = vector.extract_strided_slice %246 {offsets = [0, 33], sizes = [8, 256], strides = [1, 1]} : vector<8x384xf32> to vector<8x256xf32>
    %269 = arith.mulf %85, %268 : vector<8x256xf32>
    %270 = arith.addf %267, %269 : vector<8x256xf32>
    %271 = vector.extract_strided_slice %246 {offsets = [0, 34], sizes = [8, 256], strides = [1, 1]} : vector<8x384xf32> to vector<8x256xf32>
    %272 = arith.mulf %88, %271 : vector<8x256xf32>
    %273 = arith.addf %270, %272 : vector<8x256xf32>
    %c0_14 = arith.constant 0 : index
    %c8 = arith.constant 8 : index
    %c0_15 = arith.constant 0 : index
    %274 = vector.load %arg3[%c0_14, %c8, %c0_15] : memref<1x16x256xf32, #tpu.memory_space<vmem>>, vector<1x8x256xf32>
    %275 = vector.shape_cast %274 : vector<1x8x256xf32> to vector<8x256xf32>
    %276 = vector.shape_cast %273 : vector<8x256xf32> to vector<1x8x256xf32>
    tpu.vector_store %arg3[%c0_14, %c8, %c0_15], %276 {strides = array<i32>} : memref<1x16x256xf32, #tpu.memory_space<vmem>>, vector<1x8x256xf32>,
    return
  }
  func.func @transform_0(%arg0: i32) -> (i32, i32, i32) {
    %c0_i32 = arith.constant 0 : i32
    %c0_i32_0 = arith.constant 0 : i32
    %c0_i32_1 = arith.constant 0 : i32
    return %arg0, %c0_i32, %c0_i32_0 : i32, i32, i32
  }
  func.func @transform_1(%arg0: i32) -> (i32, i32) {
    %c0_i32 = arith.constant 0 : i32
    %c0_i32_0 = arith.constant 0 : i32
    %c0_i32_1 = arith.constant 0 : i32
    return %c0_i32, %c0_i32_0 : i32, i32
  }
  func.func @transform_2(%arg0: i32) -> (i32, i32, i32) {
    %c0_i32 = arith.constant 0 : i32
    %c0_i32_0 = arith.constant 0 : i32
    %c0_i32_1 = arith.constant 0 : i32
    return %arg0, %c0_i32, %c0_i32_0 : i32, i32, i32
  }
}

</mosaic_0001>

<bundles_post_ra>
// kernel: conv_subset_forward.1
= control target key start
LH: loop header
LB: loop body
LE: loop exit
PB: predicated region body
PF: predicated region fallthrough
CT: control target
= control target key end

     0   :  { %s1380_s9 = smov 0   ;;  %s2124_s0 = inlined_call_operand.vmem [shape: bf16[2,6,256], index: 0, kind: input, shape index: {}]   ;;  %s2125_s1 = inlined_call_operand.vmem [shape: f32[8,27], index: 1, kind: input, shape index: {}]   ;;  %s2126_s2 = inlined_call_operand.vmem [shape: f32[2,16,256], index: 2, kind: output, shape index: {}]  }
   0x1 LB: > { %s1236_s10 = sadd.s32 4294967295, %s1327_s9   ;;  %p1240_p0 = scmp.ge.s32.totalorder %s1327_s9, 1  ;;  %s1327_s9 = sphi %s1380_s9, %s12_s9  }
   0x2   : > { %p112_p1 = scmp.lt.s32.totalorder %s1327_s9, 3 }
   0x4   : > { %p113_p2 = pnand %p1240_p0, %p112_p1 }
   0x5   : > { %p134_p3 = scmp.lt.s32.totalorder (!%p113_p2), %s1236_s10, 1  ;;  %s1357_s17 = smov (!%p113_p2), 127  }
   0x6   : > { %116 = sbr.rel (%p113_p2) target bundleno = 635 (0x27b), region = 28  ;;  %s1358_s18 = smov (!%p113_p2), 126  }
   0x7   : > { %s1359_s19 = smov (!%p113_p2), 112   ;;  %s1360_s20 = smov (!%p113_p2), 111  }
   0x8   : > { %s1361_s21 = smov (!%p113_p2), 110   ;;  %s1362_s22 = smov (!%p113_p2), 96  }
   0x9   : > { %s1363_s23 = smov (!%p113_p2), 95   ;;  %s1364_s24 = smov (!%p113_p2), 94  }
   0xb   : > { %v1391_v0 = vld [vmem:[%s2125_s1] sm:$0xff]  ;;  %v1329_v1 = vmov 0   ;;  %v1330_v2 = vmov 2   ;;  %v1331_v3 = vmov 4   ;;  %v1332_v4 = vmov 1   ;;  %s2128_s10 = smov (!%p134_p3, %s1236_s10), 1 }
   0xc   : > { %1293 = vset.pattern.permute.xlu0 %v1329_v1  ;;  %1295 = vset.pattern.permute.xlu1 %v1330_v2  ;;  %v1333_v5 = vmov 3   ;;  %v1334_v6 = vmov 5   ;;  %v1335_v7 = vmov 6   ;;  %v1336_v8 = vmov 8   ;;  %s1247_s13 = sshll.u32 %s2128_s10, 3  ;;  %s1248_s25 = sshll.u32 %s2128_s10, 5 }
   0xd   : > { %156 = vperm.xlu0 %1293, %v1391_v0   ;;  %164 = vperm.xlu1 %1295, %v1391_v0   ;;  %v1337_v9 = vmov 7   ;;  %v1338_v10 = vmov 9   ;;  %v1339_v11 = vmov 10   ;;  %v1340_v12 = vmov 13   ;;  %s138_s16 = scalar_lea.vmem %s2124_s0, %s1247_s13  ;;  %s1953_s28 = scalar_lea.vmem %s2126_s2, %s1248_s25 }
   0xe   : > { %1297 = vset.pattern.permute.xlu2 %v1331_v3  ;;  %v1341_v13 = vmov 11   ;;  %v1342_v14 = vmov 12   ;;  %v1343_v15 = vmov 14   ;;  %v1344_v16 = vmov 15   ;;  %v144_v22 = vld [vmem:[%s138_s16] sm:$0x77] }
   0xf   : > { %172 = vperm.xlu2 %1297, %v1391_v0   ;;  %v1345_v17 = vmov 18   ;;  %v1346_v18 = vmov 16   ;;  %v1347_v19 = vmov 17   ;;  %v1348_v20 = vmov 19  }
  0x10   : > { %v1349_v21 = vmov 20   ;;  %v1350_v23 = vmov 21   ;;  %v146_v24 = vunpack.c.h.bf16 %v144_v22  ;;  %v145_v25 = vunpack.c.l.bf16 %v144_v22 }
  0x11   : > { %v1351_v26 = vmov 22   ;;  %v1352_v27 = vmov 24   ;;  %v1353_v28 = vmov 0.0   ;;  %v1354_v29 = vmov 25  }
  0x12   : > { %148 = vst [vmem:[#allocation2] sm:$0x3f] %v146_v24  ;;  %v1355_v30 = vmov 23   ;;  %v1356_v31 = vmov 26   ;;  %vm282_vm0 = vcmask 1039360   ;;  %vm301_vm1 = vcmask 1031168  }
  0x13   : > { %147 = vst [vmem:[#allocation2 + $0x10] sm:$0x3f] %v145_v25  ;;  %vm320_vm2 = vcmask 916480   ;;  %vm339_vm3 = vcmask 908288   ;;  %vm358_vm4 = vcmask 900096   ;;  %vm377_vm5 = vcmask 785408  }
  0x14   : > { %149 = vst [vmem:[#allocation2 + $0x8] sm:$0x3f] %v1353_v28  ;;  %vm396_vm6 = vcmask 777216   ;;  %vm415_vm7 = vcmask 769024  }
  0x15   : > { %1294 = vset.pattern.permute.xlu0 %v1332_v4  ;;  %1296 = vset.pattern.permute.xlu1 %v1333_v5 }
  0x16   : > { %160 = vperm.xlu0 %1294, %v1391_v0   ;;  %168 = vperm.xlu1 %1296, %v1391_v0  }
  0x17   : > { %1298 = vset.pattern.permute.xlu2 %v1334_v6 }
  0x18   : > { %176 = vperm.xlu2 %1298, %v1391_v0  }
  0x19   : > { %v1436_v35 = vld [vmem:[#allocation2] sm:$0x3f] }
  0x1a   : > { %v1438_v36 = vld [vmem:[#allocation2 + $0x10] sm:$0x3f]  ;;  %v1444_v38 = vperm.slane %v1436_v35, 0 }
  0x1b   : > { %v1432_v33 = vld [vmem:[#allocation2 + $0x8] sm:$0x3f]  ;;  %v1447_v39 = vperm.slane %v1438_v36, 0 }
  0x1c   : > { %v1441_v37 = vperm.slane %v1432_v33, 0 }
  0x1e   : > { %1299 = vset.pattern.permute.xlu1 %v1335_v7  ;;  %1301 = vset.pattern.permute.xlu0 %v1336_v8 }
  0x1f   : > { %180 = vperm.xlu1 %1299, %v1391_v0   ;;  %188 = vperm.xlu0 %1301, %v1391_v0  }
  0x20   : > { %1300 = vset.pattern.permute.xlu2 %v1337_v9 }
  0x21   : > { %184 = vperm.xlu2 %1300, %v1391_v0  }
  0x27   : > { %1302 = vset.pattern.permute.xlu1 %v1338_v10  ;;  %1306 = vset.pattern.permute.xlu0 %v1340_v12 }
  0x28   : > { %192 = vperm.xlu1 %1302, %v1391_v0   ;;  %208 = vperm.xlu0 %1306, %v1391_v0  }
  0x29   : > { %1303 = vset.pattern.permute.xlu2 %v1339_v11 }
  0x2a   : > { %196 = vperm.xlu2 %1303, %v1391_v0  }
  0x30   : > { %1304 = vset.pattern.permute.xlu1 %v1341_v13  ;;  %1311 = vset.pattern.permute.xlu0 %v1345_v17 }
  0x31   : > { %200 = vperm.xlu1 %1304, %v1391_v0   ;;  %228 = vperm.xlu0 %1311, %v1391_v0  }
  0x32   : > { %1305 = vset.pattern.permute.xlu2 %v1342_v14  ;;  %v1550_v14 = vperm.slane %v1432_v33, 1 }
  0x33   : > { %204 = vperm.xlu2 %1305, %v1391_v0  }
  0x39   : > { %1307 = vset.pattern.permute.xlu1 %v1343_v15  ;;  %1316 = vset.pattern.permute.xlu0 %v1355_v30  ;;  %v1553_v15 = vperm.slane %v1436_v35, 1 }
  0x3a   : > { %212 = vperm.xlu1 %1307, %v1391_v0   ;;  %248 = vperm.xlu0 %1316, %v1391_v0  }
  0x3b   : > { %1308 = vset.pattern.permute.xlu2 %v1344_v16  ;;  %v1556_v16 = vperm.slane %v1438_v36, 1 }
  0x3c   : > { %216 = vperm.xlu2 %1308, %v1391_v0  }
  0x42   : > { %1309 = vset.pattern.permute.xlu1 %v1346_v18  ;;  %1320 = vset.pattern.permute.xlu0 %v1356_v31 }
  0x43   : > { %220 = vperm.xlu1 %1309, %v1391_v0  }
  0x44   : > { %1310 = vset.pattern.permute.xlu2 %v1347_v19 }
  0x45   : > { %224 = vperm.xlu2 %1310, %v1391_v0  }
  0x4b   : > { %1312 = vset.pattern.permute.xlu1 %v1348_v20 }
  0x4c   : > { %232 = vperm.xlu1 %1312, %v1391_v0  }
  0x4d   : > { %1313 = vset.pattern.permute.xlu2 %v1349_v21 }
  0x4e   : > { %236 = vperm.xlu2 %1313, %v1391_v0  }
  0x54   : > { %1314 = vset.pattern.permute.xlu1 %v1350_v23 }
  0x55   : > { %240 = vperm.xlu1 %1314, %v1391_v0  }
  0x56   : > { %1315 = vset.pattern.permute.xlu2 %v1351_v26 }
  0x57   : > { %244 = vperm.xlu2 %1315, %v1391_v0  }
  0x5d   : > { %1317 = vset.pattern.permute.xlu1 %v1352_v27 }
  0x5e   : > { %252 = vperm.xlu1 %1317, %v1391_v0  }
  0x5f   : > { %1318 = vset.pattern.permute.xlu2 %v1354_v29 }
  0x60   : > { %256 = vperm.xlu2 %1318, %v1391_v0  }
  0x66   : > { %1319 = vset.pattern.permute.xlu1 %v1356_v31 }
  0x67   : > { %260 = vperm.xlu1 %1319, %v1391_v0  }
  0x69   : > { %v1434_v34 = vpop.permute.xlu2 %172 }
  0x6a   : > { %v329_v54 = vmul.f32 %v1441_v37, %v1434_v34  ;;  %v328_v55 = vmul.f32 %v1444_v38, %v1434_v34  ;;  %v327_v56 = vmul.f32 %v1447_v39, %v1434_v34 }
  0x72   : > { %v1462_v45 = vpop.permute.xlu2 %176 }
  0x73   : > { %v348_v59 = vmul.f32 %v1441_v37, %v1462_v45  ;;  %v347_v60 = vmul.f32 %v1444_v38, %v1462_v45  ;;  %v346_v61 = vmul.f32 %v1447_v39, %v1462_v45 }
  0x7b   : > { %v1475_v50 = vpop.permute.xlu2 %184 }
  0x7c   : > { %v386_v5 = vmul.f32 %v1441_v37, %v1475_v50  ;;  %v385_v6 = vmul.f32 %v1444_v38, %v1475_v50  ;;  %v384_v7 = vmul.f32 %v1447_v39, %v1475_v50 }
  0x7f   : > { %v1430_v32 = vpop.permute.xlu0 %156  ;;  %v1457_v44 = vpop.permute.xlu1 %164 }
  0x80   : > { %v291_v46 = vmul.f32 %v1441_v37, %v1457_v44  ;;  %v290_v47 = vmul.f32 %v1444_v38, %v1457_v44  ;;  %v289_v48 = vmul.f32 %v1447_v39, %v1457_v44 }
  0x84   : > { %v1492_v57 = vpop.permute.xlu2 %196 }
  0x85   : > { %v431_v18 = vmul.f32 %v1550_v14, %v1492_v57  ;;  %v430_v19 = vmul.f32 %v1553_v15, %v1492_v57  ;;  %v429_v20 = vmul.f32 %v1556_v16, %v1492_v57 }
  0x88   : > { %v1449_v40 = vpop.permute.xlu0 %160  ;;  %v1473_v49 = vpop.permute.xlu1 %168 }
  0x89   : > { %v272_v41 = vmul.f32 %v1441_v37, %v1449_v40  ;;  %v271_v42 = vmul.f32 %v1444_v38, %v1449_v40  ;;  %v270_v43 = vmul.f32 %v1447_v39, %v1449_v40  ;;  %v310_v51 = vmul.f32 %v1441_v37, %v1473_v49 }
  0x8a   : > { %v309_v52 = vmul.f32 %v1444_v38, %v1473_v49  ;;  %v308_v53 = vmul.f32 %v1447_v39, %v1473_v49 }
  0x8b   : > { %280 = vrot.lane.b32.xlu1 %v272_v41, %s1357_s17  ;;  %278 = vrot.lane.b32.xlu0 %v271_v42, %s1357_s17 }
  0x8c   : > { %276 = vrot.lane.b32.xlu2 %v270_v43, %s1357_s17 }
  0x8d   : > { %v1505_v62 = vpop.permute.xlu2 %204 }
  0x8e   : > { %v467_v27 = vmul.f32 %v1550_v14, %v1505_v62  ;;  %v466_v28 = vmul.f32 %v1553_v15, %v1505_v62  ;;  %v465_v29 = vmul.f32 %v1556_v16, %v1505_v62 }
  0x91   : > { %v1496_v58 = vpop.permute.xlu1 %180  ;;  %v1534_v8 = vpop.permute.xlu0 %188 }
  0x92   : > { %v367_v0 = vmul.f32 %v1441_v37, %v1496_v58  ;;  %v366_v1 = vmul.f32 %v1444_v38, %v1496_v58  ;;  %v365_v2 = vmul.f32 %v1447_v39, %v1496_v58  ;;  %v405_v10 = vmul.f32 %v1441_v37, %v1534_v8 }
  0x93   : > { %299 = vrot.lane.b32.xlu1 %v291_v46, %s1358_s18  ;;  %297 = vrot.lane.b32.xlu0 %v290_v47, %s1358_s18  ;;  %v404_v11 = vmul.f32 %v1444_v38, %v1534_v8  ;;  %v403_v12 = vmul.f32 %v1447_v39, %v1534_v8 }
  0x94   : > { %295 = vrot.lane.b32.xlu2 %v289_v48, %s1358_s18 }
  0x96   : > { %v1521_v3 = vpop.permute.xlu2 %216 }
  0x9a   : > { %v1510_v63 = vpop.permute.xlu1 %192  ;;  %v1595_v31 = vpop.permute.xlu0 %208 }
  0x9b   : > { %318 = vrot.lane.b32.xlu1 %v310_v51, %s1359_s19  ;;  %316 = vrot.lane.b32.xlu0 %v309_v52, %s1359_s19  ;;  %v485_v41 = vmul.f32 %v1550_v14, %v1595_v31  ;;  %v484_v42 = vmul.f32 %v1553_v15, %v1595_v31  ;;  %v483_v43 = vmul.f32 %v1556_v16, %v1595_v31 }
  0x9c   : > { %314 = vrot.lane.b32.xlu2 %v308_v53, %s1359_s19 }
  0x9f   : > { %v1536_v9 = vpop.permute.xlu2 %224 }
  0xa3   : > { %337 = vrot.lane.b32.xlu1 %v329_v54, %s1360_s20  ;;  %335 = vrot.lane.b32.xlu0 %v328_v55, %s1360_s20  ;;  %v1523_v4 = vpop.permute.xlu1 %200  ;;  %v1614_v52 = vpop.permute.xlu0 %228  ;;  %v521_v55 = vmul.f32 %v1550_v14, %v1521_v3 }
  0xa4   : > { %333 = vrot.lane.b32.xlu2 %v327_v56, %s1360_s20  ;;  %v449_v22 = vmul.f32 %v1550_v14, %v1523_v4  ;;  %v448_v23 = vmul.f32 %v1553_v15, %v1523_v4  ;;  %v447_v24 = vmul.f32 %v1556_v16, %v1523_v4  ;;  %v520_v56 = vmul.f32 %v1553_v15, %v1521_v3 }
  0xa8   : > { %v1558_v17 = vpop.permute.xlu2 %236 }
  0xab   : > { %356 = vrot.lane.b32.xlu1 %v348_v59, %s1361_s21  ;;  %354 = vrot.lane.b32.xlu0 %v347_v60, %s1361_s21  ;;  %v519_v59 = vmul.f32 %v1556_v16, %v1521_v3 }
  0xac   : > { %352 = vrot.lane.b32.xlu2 %v346_v61, %s1361_s21  ;;  %v1544_v13 = vpop.permute.xlu1 %212  ;;  %v1631_v61 = vpop.permute.xlu0 %248 }
  0xad   : > { %v503_v47 = vmul.f32 %v1550_v14, %v1544_v13  ;;  %v502_v48 = vmul.f32 %v1553_v15, %v1544_v13  ;;  %v501_v53 = vmul.f32 %v1556_v16, %v1544_v13 }
  0xb1   : > { %v1577_v25 = vpop.permute.xlu2 %244 }
  0xb3   : > { %375 = vrot.lane.b32.xlu1 %v367_v0, %s1362_s22  ;;  %373 = vrot.lane.b32.xlu0 %v366_v1, %s1362_s22 }
  0xb4   : > { %371 = vrot.lane.b32.xlu2 %v365_v2, %s1362_s22 }
  0xb5   : > { %v1568_v21 = vpop.permute.xlu1 %220 }
  0xb6   : > { %v539_v1 = vmul.f32 %v1550_v14, %v1568_v21  ;;  %v538_v2 = vmul.f32 %v1553_v15, %v1568_v21 }
  0xba   : > { %v1593_v30 = vpop.permute.xlu2 %256 }
  0xbb   : > { %394 = vrot.lane.b32.xlu1 %v386_v5, %s1363_s23  ;;  %392 = vrot.lane.b32.xlu0 %v385_v6, %s1363_s23  ;;  %v537_v5 = vmul.f32 %v1556_v16, %v1568_v21 }
  0xbc   : > { %390 = vrot.lane.b32.xlu2 %v384_v7, %s1363_s23 }
  0xbe   : > { %v1582_v26 = vpop.permute.xlu1 %232 }
  0xc3   : > { %413 = vrot.lane.b32.xlu1 %v405_v10, %s1364_s24  ;;  %411 = vrot.lane.b32.xlu0 %v404_v11, %s1364_s24  ;;  %v265_v10 = vmul.f32 %v1447_v39, %v1430_v32  ;;  %v266_v11 = vmul.f32 %v1444_v38, %v1430_v32 }
  0xc4   : > { %409 = vrot.lane.b32.xlu2 %v403_v12, %s1364_s24 }
  0xc7   : > { %v1597_v37 = vpop.permute.xlu1 %240 }
  0xcb   : > { %439 = vrot.lane.b32.xlu1 %v431_v18, %s1357_s17  ;;  %437 = vrot.lane.b32.xlu0 %v430_v19, %s1357_s17 }
  0xcc   : > { %435 = vrot.lane.b32.xlu2 %v429_v20, %s1357_s17 }
  0xd0   : > { %v1612_v51 = vpop.permute.xlu1 %252 }
  0xd3   : > { %457 = vrot.lane.b32.xlu1 %v449_v22, %s1358_s18  ;;  %455 = vrot.lane.b32.xlu0 %v448_v23, %s1358_s18  ;;  %v557_v23 = vmul.f32 %v1550_v14, %v1536_v9  ;;  %v1662_v14 = vperm.slane %v1436_v35, 2 }
  0xd4   : > { %453 = vrot.lane.b32.xlu2 %v447_v24, %s1358_s18  ;;  %v556_v24 = vmul.f32 %v1553_v15, %v1536_v9 }
  0xd9   : > { %v1629_v60 = vpop.permute.xlu1 %260 }
  0xdb   : > { %475 = vrot.lane.b32.xlu1 %v467_v27, %s1359_s19  ;;  %473 = vrot.lane.b32.xlu0 %v466_v28, %s1359_s19  ;;  %v555_v27 = vmul.f32 %v1556_v16, %v1536_v9  ;;  %v1659_v28 = vperm.slane %v1432_v33, 2 }
  0xdc   : > { %471 = vrot.lane.b32.xlu2 %v465_v29, %s1359_s19 }
  0xe3   : > { %493 = vrot.lane.b32.xlu1 %v485_v41, %s1360_s20  ;;  %491 = vrot.lane.b32.xlu0 %v484_v42, %s1360_s20 }
  0xe4   : > { %489 = vrot.lane.b32.xlu2 %v483_v43, %s1360_s20  ;;  %v1667_v43 = vperm.slane %v1438_v36, 2 }
  0xe6   : > { %v277_v46 = vpop.permute.xlu2 %276 }
  0xeb   : > { %511 = vrot.lane.b32.xlu1 %v503_v47, %s1361_s21  ;;  %509 = vrot.lane.b32.xlu0 %v502_v48, %s1361_s21  ;;  %v582_v48 = vmul.f32 %v1659_v28, %v1582_v26 }
  0xec   : > { %507 = vrot.lane.b32.xlu2 %v501_v53, %s1361_s21  ;;  %v581_v53 = vmul.f32 %v1662_v14, %v1582_v26 }
  0xee   : > { %v296_v54 = vpop.permute.xlu2 %295 }
  0xf3   : > { %529 = vrot.lane.b32.xlu1 %v521_v55, %s1362_s22  ;;  %527 = vrot.lane.b32.xlu0 %v520_v56, %s1362_s22  ;;  %v580_v55 = vmul.f32 %v1667_v43, %v1582_v26 }
  0xf4   : > { %525 = vrot.lane.b32.xlu2 %v519_v59, %s1362_s22 }
  0xf6   : > { %v315_v0 = vpop.permute.xlu2 %314 }
  0xfb   : > { %547 = vrot.lane.b32.xlu1 %v539_v1, %s1363_s23  ;;  %545 = vrot.lane.b32.xlu0 %v538_v2, %s1363_s23 }
  0xfc   : > { %543 = vrot.lane.b32.xlu2 %v537_v5, %s1363_s23 }
  0xfd   : > { %v281_v6 = vpop.permute.xlu1 %280  ;;  %v279_v7 = vpop.permute.xlu0 %278 }
  0xfe   : > { %v283_v12 = vsel %vm282_vm0, %v277_v46, %v279_v7  ;;  %v284_v18 = vsel %vm282_vm0, %v279_v7, %v281_v6  ;;  %v334_v19 = vpop.permute.xlu2 %333  ;;  %v600_v7 = vmul.f32 %v1659_v28, %v1558_v17 }
  0xff   : > { %v287_v20 = vadd.f32 %v283_v12, %v265_v10  ;;  %v288_v22 = vadd.f32 %v284_v18, %v266_v11  ;;  %v599_v10 = vmul.f32 %v1662_v14, %v1558_v17  ;;  %v598_v11 = vmul.f32 %v1667_v43, %v1558_v17 }
 0x103   : > { %565 = vrot.lane.b32.xlu1 %v557_v23, %s1364_s24  ;;  %563 = vrot.lane.b32.xlu0 %v556_v24, %s1364_s24 }
 0x104   : > { %561 = vrot.lane.b32.xlu2 %v555_v27, %s1364_s24  ;;  %v618_v27 = vmul.f32 %v1659_v28, %v1597_v37 }
 0x105   : > { %v300_v38 = vpop.permute.xlu1 %299  ;;  %v298_v39 = vpop.permute.xlu0 %297 }
 0x106   : > { %v302_v29 = vsel %vm301_vm1, %v296_v54, %v298_v39  ;;  %v303_v41 = vsel %vm301_vm1, %v298_v39, %v300_v38  ;;  %v353_v42 = vpop.permute.xlu2 %352  ;;  %v617_v38 = vmul.f32 %v1662_v14, %v1597_v37  ;;  %v616_v39 = vmul.f32 %v1667_v43, %v1597_v37 }
 0x107   : > { %v306_v46 = vadd.f32 %v302_v29, %v287_v20  ;;  %v307_v47 = vadd.f32 %v303_v41, %v288_v22 }
 0x10b   : > { %590 = vrot.lane.b32.xlu1 %v582_v48, %s1357_s17  ;;  %588 = vrot.lane.b32.xlu0 %v581_v53, %s1357_s17 }
 0x10c   : > { %586 = vrot.lane.b32.xlu2 %v580_v55, %s1357_s17  ;;  %v636_v55 = vmul.f32 %v1659_v28, %v1577_v25 }
 0x10d   : > { %v319_v54 = vpop.permute.xlu1 %318  ;;  %v317_v56 = vpop.permute.xlu0 %316 }
 0x10e   : > { %v321_v59 = vsel %vm320_vm2, %v315_v0, %v317_v56  ;;  %v322_v1 = vsel %vm320_vm2, %v317_v56, %v319_v54  ;;  %v372_v2 = vpop.permute.xlu2 %371  ;;  %v635_v54 = vmul.f32 %v1662_v14, %v1577_v25  ;;  %v634_v56 = vmul.f32 %v1667_v43, %v1577_v25 }
 0x10f   : > { %v325_v5 = vadd.f32 %v321_v59, %v306_v46  ;;  %v326_v6 = vadd.f32 %v322_v1, %v307_v47 }
 0x113   : > { %608 = vrot.lane.b32.xlu1 %v600_v7, %s1358_s18  ;;  %606 = vrot.lane.b32.xlu0 %v599_v10, %s1358_s18 }
 0x114   : > { %604 = vrot.lane.b32.xlu2 %v598_v11, %s1358_s18  ;;  %v654_v11 = vmul.f32 %v1659_v28, %v1631_v61 }
 0x115   : > { %v338_v0 = vpop.permute.xlu1 %337  ;;  %v336_v12 = vpop.permute.xlu0 %335 }
 0x116   : > { %v340_v18 = vsel %vm339_vm3, %v334_v19, %v336_v12  ;;  %v341_v20 = vsel %vm339_vm3, %v336_v12, %v338_v0  ;;  %v391_v22 = vpop.permute.xlu2 %390  ;;  %v653_v0 = vmul.f32 %v1662_v14, %v1631_v61  ;;  %v652_v12 = vmul.f32 %v1667_v43, %v1631_v61 }
 0x117   : > { %v344_v23 = vadd.f32 %v340_v18, %v325_v5  ;;  %v345_v24 = vadd.f32 %v341_v20, %v326_v6 }
 0x11b   : > { %626 = vrot.lane.b32.xlu1 %v618_v27, %s1359_s19  ;;  %624 = vrot.lane.b32.xlu0 %v617_v38, %s1359_s19 }
 0x11c   : > { %622 = vrot.lane.b32.xlu2 %v616_v39, %s1359_s19  ;;  %v672_v39 = vmul.f32 %v1659_v28, %v1612_v51 }
 0x11d   : > { %v357_v19 = vpop.permute.xlu1 %356  ;;  %v355_v29 = vpop.permute.xlu0 %354 }
 0x11e   : > { %v359_v41 = vsel %vm358_vm4, %v353_v42, %v355_v29  ;;  %v360_v46 = vsel %vm358_vm4, %v355_v29, %v357_v19  ;;  %v410_v47 = vpop.permute.xlu2 %409  ;;  %v671_v19 = vmul.f32 %v1662_v14, %v1612_v51  ;;  %v670_v29 = vmul.f32 %v1667_v43, %v1612_v51 }
 0x11f   : > { %v363_v48 = vadd.f32 %v359_v41, %v344_v23  ;;  %v364_v53 = vadd.f32 %v360_v46, %v345_v24 }
 0x123   : > { %644 = vrot.lane.b32.xlu1 %v636_v55, %s1360_s20  ;;  %642 = vrot.lane.b32.xlu0 %v635_v54, %s1360_s20 }
 0x124   : > { %640 = vrot.lane.b32.xlu2 %v634_v56, %s1360_s20  ;;  %v425_v56 = vmul.f32 %v1553_v15, %v1510_v63 }
 0x125   : > { %v376_v42 = vpop.permute.xlu1 %375  ;;  %v374_v59 = vpop.permute.xlu0 %373 }
 0x126   : > { %v378_v1 = vsel %vm377_vm5, %v372_v2, %v374_v59  ;;  %v379_v5 = vsel %vm377_vm5, %v374_v59, %v376_v42  ;;  %v436_v6 = vpop.permute.xlu2 %435  ;;  %v424_v42 = vmul.f32 %v1556_v16, %v1510_v63  ;;  %v690_v59 = vmul.f32 %v1659_v28, %v1593_v30 }
 0x127   : > { %v382_v7 = vadd.f32 %v378_v1, %v363_v48  ;;  %v383_v10 = vadd.f32 %v379_v5, %v364_v53  ;;  %v689_v1 = vmul.f32 %v1662_v14, %v1593_v30 }
 0x12b   : > { %662 = vrot.lane.b32.xlu1 %v654_v11, %s1361_s21  ;;  %660 = vrot.lane.b32.xlu0 %v653_v0, %s1361_s21 }
 0x12c   : > { %658 = vrot.lane.b32.xlu2 %v652_v12, %s1361_s21 }
 0x12d   : > { %v395_v2 = vpop.permute.xlu1 %394  ;;  %v393_v18 = vpop.permute.xlu0 %392 }
 0x12e   : > { %v397_v20 = vsel %vm396_vm6, %v391_v22, %v393_v18  ;;  %v398_v23 = vsel %vm396_vm6, %v393_v18, %v395_v2  ;;  %v454_v24 = vpop.permute.xlu2 %453  ;;  %v708_v18 = vmul.f32 %v1659_v28, %v1629_v60 }
 0x12f   : > { %v401_v27 = vadd.f32 %v397_v20, %v382_v7  ;;  %v402_v38 = vadd.f32 %v398_v23, %v383_v10  ;;  %v707_v20 = vmul.f32 %v1662_v14, %v1629_v60  ;;  %v706_v23 = vmul.f32 %v1667_v43, %v1629_v60 }
 0x133   : > { %680 = vrot.lane.b32.xlu1 %v672_v39, %s1362_s22  ;;  %678 = vrot.lane.b32.xlu0 %v671_v19, %s1362_s22 }
 0x134   : > { %676 = vrot.lane.b32.xlu2 %v670_v29, %s1362_s22 }
 0x135   : > { %v414_v22 = vpop.permute.xlu1 %413  ;;  %v412_v41 = vpop.permute.xlu0 %411 }
 0x136   : > { %v416_v46 = vsel %vm415_vm7, %v410_v47, %v412_v41  ;;  %v417_v48 = vsel %vm415_vm7, %v412_v41, %v414_v22  ;;  %v472_v53 = vpop.permute.xlu2 %471  ;;  %v688_v47 = vmul.f32 %v1667_v43, %v1593_v30  ;;  %v1765_v41 = vperm.slane %v1436_v35, 3 }
 0x137   : > { %v420_v55 = vadd.f32 %v416_v46, %v401_v27  ;;  %v421_v54 = vadd.f32 %v417_v48, %v402_v38  ;;  %v1760_v38 = vperm.slane %v1432_v33, 3  ;;  %v1768_v46 = vperm.slane %v1438_v36, 3 }
 0x139   : > { %v426_v5 = vadd.f32 %v424_v42, %v420_v55  ;;  %v427_v7 = vadd.f32 %v425_v56, %v421_v54  ;;  %v735_v48 = vmul.f32 %v1760_v38, %v1449_v40  ;;  %v734_v55 = vmul.f32 %v1765_v41, %v1449_v40 }
 0x13b   : > { %698 = vrot.lane.b32.xlu1 %v690_v59, %s1363_s23  ;;  %696 = vrot.lane.b32.xlu0 %v689_v1, %s1363_s23 }
 0x13c   : > { %694 = vrot.lane.b32.xlu2 %v688_v47, %s1363_s23  ;;  %v753_v47 = vmul.f32 %v1760_v38, %v1457_v44 }
 0x13d   : > { %v440_v15 = vpop.permute.xlu1 %439  ;;  %v438_v10 = vpop.permute.xlu0 %437 }
 0x13e   : > { %v441_v16 = vsel %vm282_vm0, %v436_v6, %v438_v10  ;;  %v442_v11 = vsel %vm282_vm0, %v438_v10, %v440_v15  ;;  %v490_v0 = vpop.permute.xlu2 %489  ;;  %v751_v15 = vmul.f32 %v1768_v46, %v1457_v44 }
 0x13f   : > { %v445_v12 = vadd.f32 %v441_v16, %v426_v5  ;;  %v446_v2 = vadd.f32 %v442_v11, %v427_v7 }
 0x143   : > { %716 = vrot.lane.b32.xlu1 %v708_v18, %s1364_s24  ;;  %714 = vrot.lane.b32.xlu0 %v707_v20, %s1364_s24  ;;  %v771_v20 = vmul.f32 %v1760_v38, %v1473_v49 }
 0x144   : > { %712 = vrot.lane.b32.xlu2 %v706_v23, %s1364_s24  ;;  %v769_v23 = vmul.f32 %v1768_v46, %v1473_v49 }
 0x145   : > { %v458_v6 = vpop.permute.xlu1 %457  ;;  %v456_v27 = vpop.permute.xlu0 %455 }
 0x146   : > { %v459_v39 = vsel %vm301_vm1, %v454_v24, %v456_v27  ;;  %v460_v28 = vsel %vm301_vm1, %v456_v27, %v458_v6  ;;  %v508_v19 = vpop.permute.xlu2 %507  ;;  %v733_v24 = vmul.f32 %v1768_v46, %v1449_v40  ;;  %v752_v40 = vmul.f32 %v1765_v41, %v1457_v44 }
 0x147   : > { %v463_v29 = vadd.f32 %v459_v39, %v445_v12  ;;  %v464_v22 = vadd.f32 %v460_v28, %v446_v2  ;;  %v770_v44 = vmul.f32 %v1765_v41, %v1473_v49  ;;  %v788_v49 = vmul.f32 %v1765_v41, %v1434_v34 }
 0x14b   : > { %743 = vrot.lane.b32.xlu1 %v735_v48, %s1357_s17  ;;  %741 = vrot.lane.b32.xlu0 %v734_v55, %s1357_s17  ;;  %v789_v48 = vmul.f32 %v1760_v38, %v1434_v34  ;;  %v787_v55 = vmul.f32 %v1768_v46, %v1434_v34 }
 0x14c   : > { %739 = vrot.lane.b32.xlu2 %v733_v24, %s1357_s17 }
 0x14d   : > { %v476_v54 = vpop.permute.xlu1 %475  ;;  %v474_v56 = vpop.permute.xlu0 %473 }
 0x14e   : > { %v477_v42 = vsel %vm320_vm2, %v472_v53, %v474_v56  ;;  %v478_v59 = vsel %vm320_vm2, %v474_v56, %v476_v54  ;;  %v526_v1 = vpop.permute.xlu2 %525  ;;  %v807_v56 = vmul.f32 %v1760_v38, %v1462_v45 }
 0x14f   : > { %v481_v5 = vadd.f32 %v477_v42, %v463_v29  ;;  %v482_v7 = vadd.f32 %v478_v59, %v464_v22  ;;  %v806_v42 = vmul.f32 %v1765_v41, %v1462_v45  ;;  %v805_v59 = vmul.f32 %v1768_v46, %v1462_v45 }
 0x150   : > { %v824_v45 = vmul.f32 %v1765_v41, %v1496_v58 }
 0x153   : > { %761 = vrot.lane.b32.xlu1 %v753_v47, %s1358_s18  ;;  %759 = vrot.lane.b32.xlu0 %v752_v40, %s1358_s18 }
 0x154   : > { %757 = vrot.lane.b32.xlu2 %v751_v15, %s1358_s18  ;;  %v825_v15 = vmul.f32 %v1760_v38, %v1496_v58 }
 0x155   : > { %v494_v53 = vpop.permute.xlu1 %493  ;;  %v492_v10 = vpop.permute.xlu0 %491 }
 0x156   : > { %v495_v16 = vsel %vm339_vm3, %v490_v0, %v492_v10  ;;  %v496_v11 = vsel %vm339_vm3, %v492_v10, %v494_v53  ;;  %v544_v12 = vpop.permute.xlu2 %543 }
 0x157   : > { %v499_v2 = vadd.f32 %v495_v16, %v481_v5  ;;  %v500_v18 = vadd.f32 %v496_v11, %v482_v7  ;;  %v823_v16 = vmul.f32 %v1768_v46, %v1496_v58 }
 0x15b   : > { %779 = vrot.lane.b32.xlu1 %v771_v20, %s1359_s19  ;;  %777 = vrot.lane.b32.xlu0 %v770_v44, %s1359_s19 }
 0x15c   : > { %775 = vrot.lane.b32.xlu2 %v769_v23, %s1359_s19 }
 0x15d   : > { %v512_v0 = vpop.permute.xlu1 %511  ;;  %v510_v6 = vpop.permute.xlu0 %509 }
 0x15e   : > { %v513_v27 = vsel %vm358_vm4, %v508_v19, %v510_v6  ;;  %v514_v39 = vsel %vm358_vm4, %v510_v6, %v512_v0  ;;  %v562_v28 = vpop.permute.xlu2 %561 }
 0x15f   : > { %v517_v29 = vadd.f32 %v513_v27, %v499_v2  ;;  %v518_v22 = vadd.f32 %v514_v39, %v500_v18  ;;  %v576_v27 = vmul.f32 %v1662_v14, %v1614_v52  ;;  %v575_v39 = vmul.f32 %v1667_v43, %v1614_v52 }
 0x163   : > { %797 = vrot.lane.b32.xlu1 %v789_v48, %s1360_s20  ;;  %795 = vrot.lane.b32.xlu0 %v788_v49, %s1360_s20  ;;  %v841_v49 = vmul.f32 %v1768_v46, %v1475_v50 }
 0x164   : > { %793 = vrot.lane.b32.xlu2 %v787_v55, %s1360_s20 }
 0x165   : > { %v530_v19 = vpop.permute.xlu1 %529  ;;  %v528_v24 = vpop.permute.xlu0 %527 }
 0x166   : > { %v1812_v54 = vpop.permute.xlu2 %586  ;;  %v531_v47 = vsel %vm377_vm5, %v526_v1, %v528_v24  ;;  %v532_v40 = vsel %vm377_vm5, %v528_v24, %v530_v19  ;;  %v861_v19 = vmul.f32 %v1760_v38, %v1534_v8  ;;  %v860_v24 = vmul.f32 %v1765_v41, %v1534_v8 }
 0x167   : > { %v535_v11 = vadd.f32 %v531_v47, %v517_v29  ;;  %v536_v2 = vadd.f32 %v532_v40, %v518_v22  ;;  %v843_v29 = vmul.f32 %v1760_v38, %v1475_v50  ;;  %v842_v22 = vmul.f32 %v1765_v41, %v1475_v50 }
 0x168   : > { %v1870_v38 = vperm.slane %v1436_v35, 4 }
 0x16a   : > { %v885_v47 = vmul.f32 %v1870_v38, %v1492_v57 }
 0x16b   : > { %815 = vrot.lane.b32.xlu1 %v807_v56, %s1361_s21  ;;  %813 = vrot.lane.b32.xlu0 %v806_v42, %s1361_s21  ;;  %v859_v56 = vmul.f32 %v1768_v46, %v1534_v8 }
 0x16c   : > { %811 = vrot.lane.b32.xlu2 %v805_v59, %s1361_s21  ;;  %v1867_v59 = vperm.slane %v1432_v33, 4 }
 0x16d   : > { %v548_v34 = vpop.permute.xlu1 %547  ;;  %v546_v5 = vpop.permute.xlu0 %545 }
 0x16e   : > { %v1823_v7 = vpop.permute.xlu2 %604  ;;  %v549_v53 = vsel %vm396_vm6, %v544_v12, %v546_v5  ;;  %v550_v10 = vsel %vm396_vm6, %v546_v5, %v548_v34  ;;  %v1873_v5 = vperm.slane %v1438_v36, 4  ;;  %v886_v8 = vmul.f32 %v1867_v59, %v1492_v57 }
 0x16f   : > { %v553_v1 = vadd.f32 %v549_v53, %v535_v11  ;;  %v554_v18 = vadd.f32 %v550_v10, %v536_v2  ;;  %v904_v10 = vmul.f32 %v1867_v59, %v1523_v4 }
 0x170   : > { %v884_v40 = vmul.f32 %v1873_v5, %v1492_v57  ;;  %v902_v11 = vmul.f32 %v1873_v5, %v1523_v4 }
 0x173   : > { %833 = vrot.lane.b32.xlu1 %v825_v15, %s1362_s22  ;;  %831 = vrot.lane.b32.xlu0 %v824_v45, %s1362_s22 }
 0x174   : > { %829 = vrot.lane.b32.xlu2 %v823_v16, %s1362_s22  ;;  %v903_v16 = vmul.f32 %v1870_v38, %v1523_v4 }
 0x175   : > { %v566_v20 = vpop.permute.xlu1 %565  ;;  %v564_v44 = vpop.permute.xlu0 %563 }
 0x176   : > { %v567_v23 = vsel %vm415_vm7, %v562_v28, %v564_v44  ;;  %v568_v12 = vsel %vm415_vm7, %v564_v44, %v566_v20  ;;  %v1840_v0 = vpop.permute.xlu2 %622  ;;  %v921_v20 = vmul.f32 %v1870_v38, %v1505_v62  ;;  %v920_v44 = vmul.f32 %v1873_v5, %v1505_v62 }
 0x177   : > { %v571_v6 = vadd.f32 %v567_v23, %v553_v1  ;;  %v572_v58 = vadd.f32 %v568_v12, %v554_v18  ;;  %v922_v18 = vmul.f32 %v1867_v59, %v1505_v62 }
 0x179   : > { %v577_v48 = vadd.f32 %v575_v39, %v571_v6  ;;  %v578_v28 = vadd.f32 %v576_v27, %v572_v58  ;;  %v940_v6 = vmul.f32 %v1867_v59, %v1595_v31  ;;  %v939_v58 = vmul.f32 %v1870_v38, %v1595_v31 }
 0x17a   : > { %v938_v27 = vmul.f32 %v1873_v5, %v1595_v31 }
 0x17b   : > { %851 = vrot.lane.b32.xlu1 %v843_v29, %s1363_s23  ;;  %849 = vrot.lane.b32.xlu0 %v842_v22, %s1363_s23 }
 0x17c   : > { %847 = vrot.lane.b32.xlu2 %v841_v49, %s1363_s23 }
 0x17d   : > { %v591_v14 = vpop.permute.xlu1 %590  ;;  %v589_v55 = vpop.permute.xlu0 %588 }
 0x17e   : > { %v1855_v43 = vpop.permute.xlu2 %640  ;;  %v592_v29 = vsel %vm282_vm0, %v1812_v54, %v589_v55  ;;  %v593_v22 = vsel %vm282_vm0, %v589_v55, %v591_v14  ;;  %v956_v55 = vmul.f32 %v1873_v5, %v1544_v13 }
 0x183   : > { %869 = vrot.lane.b32.xlu1 %v861_v19, %s1364_s24  ;;  %867 = vrot.lane.b32.xlu0 %v860_v24, %s1364_s24  ;;  %v596_v24 = vadd.f32 %v592_v29, %v577_v48 }
 0x184   : > { %865 = vrot.lane.b32.xlu2 %v859_v56, %s1364_s24  ;;  %v597_v56 = vadd.f32 %v593_v22, %v578_v28 }
 0x185   : > { %v609_v50 = vpop.permute.xlu1 %608  ;;  %v607_v42 = vpop.permute.xlu0 %606 }
 0x186   : > { %v659_v34 = vpop.permute.xlu2 %658  ;;  %v610_v19 = vsel %vm301_vm1, %v1823_v7, %v607_v42  ;;  %v611_v31 = vsel %vm301_vm1, %v607_v42, %v609_v50 }
 0x187   : > { %v615_v7 = vadd.f32 %v611_v31, %v597_v56  ;;  %v994_v31 = vmul.f32 %v1867_v59, %v1568_v21  ;;  %v992_v56 = vmul.f32 %v1873_v5, %v1568_v21 }
 0x18b   : > { %894 = vrot.lane.b32.xlu1 %v886_v8, %s1357_s17  ;;  %892 = vrot.lane.b32.xlu0 %v885_v47, %s1357_s17  ;;  %v958_v8 = vmul.f32 %v1867_v59, %v1544_v13  ;;  %v957_v47 = vmul.f32 %v1870_v38, %v1544_v13 }
 0x18c   : > { %890 = vrot.lane.b32.xlu2 %v884_v40, %s1357_s17  ;;  %v614_v40 = vadd.f32 %v610_v19, %v596_v24  ;;  %v993_v24 = vmul.f32 %v1870_v38, %v1568_v21 }
 0x18d   : > { %v627_v15 = vpop.permute.xlu1 %626  ;;  %v625_v45 = vpop.permute.xlu0 %624 }
 0x18e   : > { %v677_v53 = vpop.permute.xlu2 %676  ;;  %v628_v54 = vsel %vm320_vm2, %v1840_v0, %v625_v45  ;;  %v629_v14 = vsel %vm320_vm2, %v625_v45, %v627_v15 }
 0x18f   : > { %v632_v50 = vadd.f32 %v628_v54, %v614_v40  ;;  %v633_v0 = vadd.f32 %v629_v14, %v615_v7  ;;  %v728_v54 = vmul.f32 %v1768_v46, %v1430_v32 }
 0x193   : > { %912 = vrot.lane.b32.xlu1 %v904_v10, %s1358_s18  ;;  %910 = vrot.lane.b32.xlu0 %v903_v16, %s1358_s18 }
 0x194   : > { %908 = vrot.lane.b32.xlu2 %v902_v11, %s1358_s18 }
 0x195   : > { %v645_v57 = vpop.permute.xlu1 %644  ;;  %v643_v2 = vpop.permute.xlu0 %642 }
 0x196   : > { %v695_v1 = vpop.permute.xlu2 %694  ;;  %v646_v48 = vsel %vm339_vm3, %v1855_v43, %v643_v2  ;;  %v647_v28 = vsel %vm339_vm3, %v643_v2, %v645_v57  ;;  %v976_v2 = vmul.f32 %v1867_v59, %v1521_v3 }
 0x197   : > { %v650_v16 = vadd.f32 %v646_v48, %v632_v50  ;;  %v651_v11 = vadd.f32 %v647_v28, %v633_v0  ;;  %v1012_v48 = vmul.f32 %v1867_v59, %v1536_v9  ;;  %v1011_v28 = vmul.f32 %v1870_v38, %v1536_v9 }
 0x198   : > { %v1988_v50 = vperm.slane %v1436_v35, 5 }
 0x19b   : > { %930 = vrot.lane.b32.xlu1 %v922_v18, %s1359_s19  ;;  %928 = vrot.lane.b32.xlu0 %v921_v20, %s1359_s19 }
 0x19c   : > { %926 = vrot.lane.b32.xlu2 %v920_v44, %s1359_s19  ;;  %v975_v44 = vmul.f32 %v1870_v38, %v1521_v3 }
 0x19d   : > { %v663_v4 = vpop.permute.xlu1 %662  ;;  %v661_v23 = vpop.permute.xlu0 %660 }
 0x19e   : > { %v713_v12 = vpop.permute.xlu2 %712  ;;  %v664_v45 = vsel %vm358_vm4, %v659_v34, %v661_v23  ;;  %v665_v13 = vsel %vm358_vm4, %v661_v23, %v663_v4  ;;  %v974_v23 = vmul.f32 %v1873_v5, %v1521_v3 }
 0x19f   : > { %v668_v20 = vadd.f32 %v664_v45, %v650_v16  ;;  %v669_v57 = vadd.f32 %v665_v13, %v651_v11 }
 0x1a3   : > { %948 = vrot.lane.b32.xlu1 %v940_v6, %s1360_s20  ;;  %946 = vrot.lane.b32.xlu0 %v939_v58, %s1360_s20 }
 0x1a4   : > { %944 = vrot.lane.b32.xlu2 %v938_v27, %s1360_s20 }
 0x1a5   : > { %v681_v62 = vpop.permute.xlu1 %680  ;;  %v679_v39 = vpop.permute.xlu0 %678 }
 0x1a6   : > { %v1914_v49 = vpop.permute.xlu2 %739  ;;  %v682_v18 = vsel %vm377_vm5, %v677_v53, %v679_v39  ;;  %v683_v43 = vsel %vm377_vm5, %v679_v39, %v681_v62 }
 0x1a7   : > { %v686_v6 = vadd.f32 %v682_v18, %v668_v20  ;;  %v687_v58 = vadd.f32 %v683_v43, %v669_v57 }
 0x1ab   : > { %966 = vrot.lane.b32.xlu1 %v958_v8, %s1361_s21  ;;  %964 = vrot.lane.b32.xlu0 %v957_v47, %s1361_s21  ;;  %v729_v8 = vmul.f32 %v1765_v41, %v1430_v32  ;;  %v1010_v41 = vmul.f32 %v1873_v5, %v1536_v9  ;;  %v1993_v9 = vperm.slane %v1438_v36, 5 }
 0x1ac   : > { %962 = vrot.lane.b32.xlu2 %v956_v55, %s1361_s21 }
 0x1ad   : > { %v699_v42 = vpop.permute.xlu1 %698  ;;  %v697_v15 = vpop.permute.xlu0 %696  ;;  %v1035_v35 = vmul.f32 %v1993_v9, %v1582_v26 }
 0x1ae   : > { %v758_v10 = vpop.permute.xlu2 %757  ;;  %v700_v34 = vsel %vm396_vm6, %v695_v1, %v697_v15  ;;  %v701_v4 = vsel %vm396_vm6, %v697_v15, %v699_v42 }
 0x1af   : > { %v704_v53 = vadd.f32 %v700_v34, %v686_v6  ;;  %v705_v27 = vadd.f32 %v701_v4, %v687_v58 }
 0x1b3   : > { %984 = vrot.lane.b32.xlu1 %v976_v2, %s1362_s22  ;;  %982 = vrot.lane.b32.xlu0 %v975_v44, %s1362_s22  ;;  %v1053_v2 = vmul.f32 %v1993_v9, %v1558_v17 }
 0x1b4   : > { %980 = vrot.lane.b32.xlu2 %v974_v23, %s1362_s22 }
 0x1b5   : > { %v717_v62 = vpop.permute.xlu1 %716  ;;  %v715_v39 = vpop.permute.xlu0 %714 }
 0x1b6   : > { %v718_v3 = vsel %vm415_vm7, %v713_v12, %v715_v39  ;;  %v719_v1 = vsel %vm415_vm7, %v715_v39, %v717_v62  ;;  %v776_v29 = vpop.permute.xlu2 %775  ;;  %v1071_v62 = vmul.f32 %v1993_v9, %v1597_v37 }
 0x1b7   : > { %v722_v22 = vadd.f32 %v718_v3, %v704_v53  ;;  %v723_v19 = vadd.f32 %v719_v1, %v705_v27 }
 0x1b9   : > { %724 = vst [vmem:[%s1953_s28] sm:$0xff] %v722_v22 }
 0x1ba   : > { %725 = vst [vmem:[%s1953_s28 + $0x8] sm:$0xff] %v723_v19 }
 0x1bb   : > { %1002 = vrot.lane.b32.xlu1 %v994_v31, %s1363_s23  ;;  %1000 = vrot.lane.b32.xlu0 %v993_v24, %s1363_s23 }
 0x1bc   : > { %998 = vrot.lane.b32.xlu2 %v992_v56, %s1363_s23  ;;  %v1089_v56 = vmul.f32 %v1993_v9, %v1577_v25 }
 0x1bd   : > { %v744_v12 = vpop.permute.xlu1 %743  ;;  %v742_v47 = vpop.permute.xlu0 %741 }
 0x1be   : > { %v745_v14 = vsel %vm282_vm0, %v1914_v49, %v742_v47  ;;  %v746_v55 = vsel %vm282_vm0, %v742_v47, %v744_v12  ;;  %v794_v21 = vpop.permute.xlu2 %793  ;;  %v1985_v49 = vperm.slane %v1432_v33, 5  ;;  %v1036_v33 = vmul.f32 %v1988_v50, %v1582_v26 }
 0x1bf   : > { %v749_v40 = vadd.f32 %v745_v14, %v728_v54  ;;  %v750_v7 = vadd.f32 %v746_v55, %v729_v8 }
 0x1c0   : > { %v1037_v13 = vmul.f32 %v1985_v49, %v1582_v26  ;;  %v1055_v57 = vmul.f32 %v1985_v49, %v1558_v17  ;;  %v1054_v26 = vmul.f32 %v1988_v50, %v1558_v17  ;;  %v1073_v27 = vmul.f32 %v1985_v49, %v1597_v37 }
 0x1c1   : > { %v1072_v17 = vmul.f32 %v1988_v50, %v1597_v37  ;;  %v1091_v24 = vmul.f32 %v1985_v49, %v1577_v25  ;;  %v1090_v37 = vmul.f32 %v1988_v50, %v1577_v25  ;;  %v1108_v25 = vmul.f32 %v1988_v50, %v1631_v61 }
 0x1c3   : > { %1020 = vrot.lane.b32.xlu1 %v1012_v48, %s1364_s24  ;;  %1018 = vrot.lane.b32.xlu0 %v1011_v28, %s1364_s24 }
 0x1c4   : > { %1016 = vrot.lane.b32.xlu2 %v1010_v41, %s1364_s24 }
 0x1c5   : > { %v762_v32 = vpop.permute.xlu1 %761  ;;  %v760_v46 = vpop.permute.xlu0 %759 }
 0x1c6   : > { %v763_v59 = vsel %vm301_vm1, %v758_v10, %v760_v46  ;;  %v764_v0 = vsel %vm301_vm1, %v760_v46, %v762_v32  ;;  %v812_v42 = vpop.permute.xlu2 %811 }
 0x1c7   : > { %v767_v15 = vadd.f32 %v763_v59, %v749_v40  ;;  %v768_v45 = vadd.f32 %v764_v0, %v750_v7  ;;  %v1109_v40 = vmul.f32 %v1985_v49, %v1631_v61  ;;  %v1107_v7 = vmul.f32 %v1993_v9, %v1631_v61 }
 0x1c8   : > { %v1126_v61 = vmul.f32 %v1988_v50, %v1612_v51 }
 0x1cb   : > { %1045 = vrot.lane.b32.xlu1 %v1037_v13, %s1357_s17  ;;  %1043 = vrot.lane.b32.xlu0 %v1036_v33, %s1357_s17 }
 0x1cc   : > { %1041 = vrot.lane.b32.xlu2 %v1035_v35, %s1357_s17 }
 0x1cd   : > { %v780_v10 = vpop.permute.xlu1 %779  ;;  %v778_v36 = vpop.permute.xlu0 %777 }
 0x1ce   : > { %v781_v16 = vsel %vm320_vm2, %v776_v29, %v778_v36  ;;  %v782_v11 = vsel %vm320_vm2, %v778_v36, %v780_v10  ;;  %v830_v18 = vpop.permute.xlu2 %829 }
 0x1cf   : > { %v785_v43 = vadd.f32 %v781_v16, %v767_v15  ;;  %v786_v20 = vadd.f32 %v782_v11, %v768_v45  ;;  %v1125_v15 = vmul.f32 %v1993_v9, %v1612_v51  ;;  %v880_v11 = vmul.f32 %v1870_v38, %v1510_v63 }
 0x1d3   : > { %1063 = vrot.lane.b32.xlu1 %v1055_v57, %s1358_s18  ;;  %1061 = vrot.lane.b32.xlu0 %v1054_v26, %s1358_s18  ;;  %v1143_v26 = vmul.f32 %v1993_v9, %v1593_v30 }
 0x1d4   : > { %1059 = vrot.lane.b32.xlu2 %v1053_v2, %s1358_s18 }
 0x1d5   : > { %v798_v44 = vpop.permute.xlu1 %797  ;;  %v796_v34 = vpop.permute.xlu0 %795 }
 0x1d6   : > { %v799_v4 = vsel %vm339_vm3, %v794_v21, %v796_v34  ;;  %v800_v23 = vsel %vm339_vm3, %v796_v34, %v798_v44  ;;  %v848_v6 = vpop.permute.xlu2 %847 }
 0x1d7   : > { %v803_v58 = vadd.f32 %v799_v4, %v785_v43  ;;  %v804_v53 = vadd.f32 %v800_v23, %v786_v20  ;;  %v1144_v43 = vmul.f32 %v1988_v50, %v1593_v30  ;;  %v1163_v23 = vmul.f32 %v1985_v49, %v1629_v60 }
 0x1db   : > { %1081 = vrot.lane.b32.xlu1 %v1073_v27, %s1359_s19  ;;  %1079 = vrot.lane.b32.xlu0 %v1072_v17, %s1359_s19 }
 0x1dc   : > { %1077 = vrot.lane.b32.xlu2 %v1071_v62, %s1359_s19 }
 0x1dd   : > { %v816_v39 = vpop.permute.xlu1 %815  ;;  %v814_v3 = vpop.permute.xlu0 %813 }
 0x1de   : > { %v817_v1 = vsel %vm358_vm4, %v812_v42, %v814_v3  ;;  %v818_v29 = vsel %vm358_vm4, %v814_v3, %v816_v39  ;;  %v866_v22 = vpop.permute.xlu2 %865  ;;  %v1127_v42 = vmul.f32 %v1985_v49, %v1612_v51  ;;  %v879_v51 = vmul.f32 %v1873_v5, %v1510_v63 }
 0x1df   : > { %v821_v19 = vadd.f32 %v817_v1, %v803_v58  ;;  %v822_v31 = vadd.f32 %v818_v29, %v804_v53 }
 0x1e3   : > { %1099 = vrot.lane.b32.xlu1 %v1091_v24, %s1360_s20  ;;  %1097 = vrot.lane.b32.xlu0 %v1090_v37, %s1360_s20 }
 0x1e4   : > { %1095 = vrot.lane.b32.xlu2 %v1089_v56, %s1360_s20 }
 0x1e5   : > { %v834_v12 = vpop.permute.xlu1 %833  ;;  %v832_v8 = vpop.permute.xlu0 %831 }
 0x1e6   : > { %v835_v47 = vsel %vm377_vm5, %v830_v18, %v832_v8  ;;  %v836_v54 = vsel %vm377_vm5, %v832_v8, %v834_v12  ;;  %v891_v14 = vpop.permute.xlu2 %890  ;;  %v1145_v18 = vmul.f32 %v1985_v49, %v1593_v30  ;;  %v1162_v30 = vmul.f32 %v1988_v50, %v1629_v60 }
 0x1e7   : > { %v839_v55 = vadd.f32 %v835_v47, %v821_v19  ;;  %v840_v21 = vadd.f32 %v836_v54, %v822_v31 }
 0x1eb   : > { %1117 = vrot.lane.b32.xlu1 %v1109_v40, %s1361_s21  ;;  %1115 = vrot.lane.b32.xlu0 %v1108_v25, %s1361_s21 }
 0x1ec   : > { %1113 = vrot.lane.b32.xlu2 %v1107_v7, %s1361_s21 }
 0x1ed   : > { %v852_v48 = vpop.permute.xlu1 %851  ;;  %v850_v28 = vpop.permute.xlu0 %849 }
 0x1ee   : > { %v853_v41 = vsel %vm396_vm6, %v848_v6, %v850_v28  ;;  %v854_v32 = vsel %vm396_vm6, %v850_v28, %v852_v48  ;;  %v909_v46 = vpop.permute.xlu2 %908  ;;  %v1161_v6 = vmul.f32 %v1993_v9, %v1629_v60 }
 0x1ef   : > { %v857_v59 = vadd.f32 %v853_v41, %v839_v55  ;;  %v858_v0 = vadd.f32 %v854_v32, %v840_v21 }
 0x1f3   : > { %1135 = vrot.lane.b32.xlu1 %v1127_v42, %s1362_s22  ;;  %1133 = vrot.lane.b32.xlu0 %v1126_v61, %s1362_s22 }
 0x1f4   : > { %1131 = vrot.lane.b32.xlu2 %v1125_v15, %s1362_s22 }
 0x1f5   : > { %v870_v45 = vpop.permute.xlu1 %869  ;;  %v868_v13 = vpop.permute.xlu0 %867 }
 0x1f6   : > { %v871_v33 = vsel %vm415_vm7, %v866_v22, %v868_v13  ;;  %v872_v35 = vsel %vm415_vm7, %v868_v13, %v870_v45  ;;  %v927_v10 = vpop.permute.xlu2 %926 }
 0x1f7   : > { %v875_v36 = vadd.f32 %v871_v33, %v857_v59  ;;  %v876_v16 = vadd.f32 %v872_v35, %v858_v0 }
 0x1f9   : > { %v882_v20 = vadd.f32 %v880_v11, %v876_v16  ;;  %v881_v57 = vadd.f32 %v879_v51, %v875_v36 }
 0x1fb   : > { %1153 = vrot.lane.b32.xlu1 %v1145_v18, %s1363_s23  ;;  %1151 = vrot.lane.b32.xlu0 %v1144_v43, %s1363_s23  ;;  %v1031_v43 = vmul.f32 %v1988_v50, %v1614_v52 }
 0x1fc   : > { %1149 = vrot.lane.b32.xlu2 %v1143_v26, %s1363_s23 }
 0x1fd   : > { %v895_v38 = vpop.permute.xlu1 %894  ;;  %v893_v2 = vpop.permute.xlu0 %892 }
 0x1fe   : > { %v896_v63 = vsel %vm282_vm0, %v891_v14, %v893_v2  ;;  %v897_v5 = vsel %vm282_vm0, %v893_v2, %v895_v38  ;;  %v945_v44 = vpop.permute.xlu2 %944 }
 0x1ff   : > { %v900_v34 = vadd.f32 %v896_v63, %v881_v57  ;;  %v901_v4 = vadd.f32 %v897_v5, %v882_v20  ;;  %v1030_v20 = vmul.f32 %v1993_v9, %v1614_v52 }
 0x203   : > { %1171 = vrot.lane.b32.xlu1 %v1163_v23, %s1364_s24  ;;  %1169 = vrot.lane.b32.xlu0 %v1162_v30, %s1364_s24 }
 0x204   : > { %1167 = vrot.lane.b32.xlu2 %v1161_v6, %s1364_s24 }
 0x205   : > { %v913_v58 = vpop.permute.xlu1 %912  ;;  %v911_v53 = vpop.permute.xlu0 %910 }
 0x206   : > { %v914_v27 = vsel %vm301_vm1, %v909_v46, %v911_v53  ;;  %v915_v17 = vsel %vm301_vm1, %v911_v53, %v913_v58  ;;  %v963_v62 = vpop.permute.xlu2 %962 }
 0x207   : > { %v918_v49 = vadd.f32 %v914_v27, %v900_v34  ;;  %v919_v39 = vadd.f32 %v915_v17, %v901_v4 }
 0x20d   : > { %v931_v3 = vpop.permute.xlu1 %930  ;;  %v929_v1 = vpop.permute.xlu0 %928 }
 0x20e   : > { %v932_v29 = vsel %vm320_vm2, %v927_v10, %v929_v1  ;;  %v933_v60 = vsel %vm320_vm2, %v929_v1, %v931_v3  ;;  %v981_v31 = vpop.permute.xlu2 %980 }
 0x20f   : > { %v936_v22 = vadd.f32 %v932_v29, %v918_v49  ;;  %v937_v19 = vadd.f32 %v933_v60, %v919_v39 }
 0x215   : > { %v949_v24 = vpop.permute.xlu1 %948  ;;  %v947_v37 = vpop.permute.xlu0 %946 }
 0x216   : > { %v950_v56 = vsel %vm339_vm3, %v945_v44, %v947_v37  ;;  %v951_v12 = vsel %vm339_vm3, %v947_v37, %v949_v24  ;;  %v999_v54 = vpop.permute.xlu2 %998 }
 0x217   : > { %v954_v8 = vadd.f32 %v950_v56, %v936_v22  ;;  %v955_v47 = vadd.f32 %v951_v12, %v937_v19 }
 0x21d   : > { %v967_v14 = vpop.permute.xlu1 %966  ;;  %v965_v55 = vpop.permute.xlu0 %964 }
 0x21e   : > { %v968_v21 = vsel %vm358_vm4, %v963_v62, %v965_v55  ;;  %v969_v40 = vsel %vm358_vm4, %v965_v55, %v967_v14  ;;  %v1017_v48 = vpop.permute.xlu2 %1016 }
 0x21f   : > { %v972_v25 = vadd.f32 %v968_v21, %v954_v8  ;;  %v973_v7 = vadd.f32 %v969_v40, %v955_v47 }
 0x225   : > { %v985_v28 = vpop.permute.xlu1 %984  ;;  %v983_v41 = vpop.permute.xlu0 %982 }
 0x226   : > { %v1042_v59 = vpop.permute.xlu2 %1041  ;;  %v986_v0 = vsel %vm377_vm5, %v981_v31, %v983_v41  ;;  %v987_v42 = vsel %vm377_vm5, %v983_v41, %v985_v28 }
 0x227   : > { %v990_v45 = vadd.f32 %v986_v0, %v972_v25  ;;  %v991_v13 = vadd.f32 %v987_v42, %v973_v7 }
 0x22d   : > { %v1003_v32 = vpop.permute.xlu1 %1002  ;;  %v1001_v46 = vpop.permute.xlu0 %1000 }
 0x22e   : > { %v1004_v61 = vsel %vm396_vm6, %v999_v54, %v1001_v46  ;;  %v1005_v15 = vsel %vm396_vm6, %v1001_v46, %v1003_v32  ;;  %v1060_v57 = vpop.permute.xlu2 %1059 }
 0x22f   : > { %v1008_v33 = vadd.f32 %v1004_v61, %v990_v45  ;;  %v1009_v35 = vadd.f32 %v1005_v15, %v991_v13 }
 0x235   : > { %v1021_v10 = vpop.permute.xlu1 %1020  ;;  %v1019_v36 = vpop.permute.xlu0 %1018 }
 0x236   : > { %v1022_v16 = vsel %vm415_vm7, %v1017_v48, %v1019_v36  ;;  %v1023_v11 = vsel %vm415_vm7, %v1019_v36, %v1021_v10  ;;  %v1078_v5 = vpop.permute.xlu2 %1077 }
 0x237   : > { %v1026_v51 = vadd.f32 %v1022_v16, %v1008_v33  ;;  %v1027_v18 = vadd.f32 %v1023_v11, %v1009_v35 }
 0x239   : > { %v1033_v26 = vadd.f32 %v1031_v43, %v1027_v18  ;;  %v1032_v38 = vadd.f32 %v1030_v20, %v1026_v51 }
 0x23d   : > { %v1046_v2 = vpop.permute.xlu1 %1045  ;;  %v1044_v63 = vpop.permute.xlu0 %1043 }
 0x23e   : > { %v1096_v4 = vpop.permute.xlu2 %1095  ;;  %v1047_v52 = vsel %vm282_vm0, %v1042_v59, %v1044_v63  ;;  %v1048_v9 = vsel %vm282_vm0, %v1044_v63, %v1046_v2 }
 0x23f   : > { %v1051_v1 = vadd.f32 %v1047_v52, %v1032_v38  ;;  %v1052_v29 = vadd.f32 %v1048_v9, %v1033_v26 }
 0x245   : > { %v1064_v44 = vpop.permute.xlu1 %1063  ;;  %v1062_v34 = vpop.permute.xlu0 %1061 }
 0x246   : > { %v1114_v53 = vpop.permute.xlu2 %1113  ;;  %v1065_v39 = vsel %vm301_vm1, %v1060_v57, %v1062_v34  ;;  %v1066_v3 = vsel %vm301_vm1, %v1062_v34, %v1064_v44 }
 0x247   : > { %v1069_v31 = vadd.f32 %v1065_v39, %v1051_v1  ;;  %v1070_v24 = vadd.f32 %v1066_v3, %v1052_v29 }
 0x24d   : > { %v1082_v23 = vpop.permute.xlu1 %1081  ;;  %v1080_v30 = vpop.permute.xlu0 %1079 }
 0x24e   : > { %v1132_v50 = vpop.permute.xlu2 %1131  ;;  %v1083_v60 = vsel %vm320_vm2, %v1078_v5, %v1080_v30  ;;  %v1084_v22 = vsel %vm320_vm2, %v1080_v30, %v1082_v23 }
 0x24f   : > { %v1087_v12 = vadd.f32 %v1083_v60, %v1069_v31  ;;  %v1088_v8 = vadd.f32 %v1084_v22, %v1070_v24 }
 0x255   : > { %v1100_v6 = vpop.permute.xlu1 %1099  ;;  %v1098_v58 = vpop.permute.xlu0 %1097 }
 0x256   : > { %v1150_v19 = vpop.permute.xlu2 %1149  ;;  %v1101_v37 = vsel %vm339_vm3, %v1096_v4, %v1098_v58  ;;  %v1102_v56 = vsel %vm339_vm3, %v1098_v58, %v1100_v6 }
 0x257   : > { %v1105_v21 = vadd.f32 %v1101_v37, %v1087_v12  ;;  %v1106_v40 = vadd.f32 %v1102_v56, %v1088_v8 }
 0x25d   : > { %v1118_v27 = vpop.permute.xlu1 %1117  ;;  %v1116_v17 = vpop.permute.xlu0 %1115 }
 0x25e   : > { %v1119_v14 = vsel %vm358_vm4, %v1114_v53, %v1116_v17  ;;  %v1120_v55 = vsel %vm358_vm4, %v1116_v17, %v1118_v27  ;;  %v1168_v0 = vpop.permute.xlu2 %1167 }
 0x25f   : > { %v1123_v48 = vadd.f32 %v1119_v14, %v1105_v21  ;;  %v1124_v28 = vadd.f32 %v1120_v55, %v1106_v40 }
 0x265   : > { %v1136_v62 = vpop.permute.xlu1 %1135  ;;  %v1134_v49 = vpop.permute.xlu0 %1133 }
 0x266   : > { %v1137_v25 = vsel %vm377_vm5, %v1132_v50, %v1134_v49  ;;  %v1138_v7 = vsel %vm377_vm5, %v1134_v49, %v1136_v62 }
 0x267   : > { %v1141_v46 = vadd.f32 %v1137_v25, %v1123_v48  ;;  %v1142_v59 = vadd.f32 %v1138_v7, %v1124_v28 }
 0x26d   : > { %v1154_v47 = vpop.permute.xlu1 %1153  ;;  %v1152_v54 = vpop.permute.xlu0 %1151 }
 0x26e   : > { %v1155_v41 = vsel %vm396_vm6, %v1150_v19, %v1152_v54  ;;  %v1156_v32 = vsel %vm396_vm6, %v1152_v54, %v1154_v47 }
 0x26f   : > { %v1159_v42 = vadd.f32 %v1155_v41, %v1141_v46  ;;  %v1160_v61 = vadd.f32 %v1156_v32, %v1142_v59 }
 0x275   : > { %v1172_v15 = vpop.permute.xlu1 %1171  ;;  %v1170_v45 = vpop.permute.xlu0 %1169 }
 0x276   : > { %v1173_v13 = vsel %vm415_vm7, %v1168_v0, %v1170_v45  ;;  %v1174_v33 = vsel %vm415_vm7, %v1170_v45, %v1172_v15 }
 0x277   : > { %v1177_v35 = vadd.f32 %v1173_v13, %v1159_v42  ;;  %v1178_v10 = vadd.f32 %v1174_v33, %v1160_v61 }
 0x279   : > { %1179 = vst [vmem:[%s1953_s28 + $0x10] sm:$0xff] %v1177_v35 }
 0x27a   : > { %1180 = vst [vmem:[%s1953_s28 + $0x18] sm:$0xff] %v1178_v10 }
 0x27b PF: > { %s12_s9 = sadd.s32 1, %s1327_s9  }
 0x27c   : > { %p9_p4 = scmp.ge.s32.totalorder %s12_s9, 4  }
 0x27e   :  { %11 = sbr.rel (!%p9_p4) target bundleno = 1 (0x1), region = 58 }

</bundles_post_ra>
